<compile_context>
chip_gen: v7x
topology: tpu7x:2x2x1
jax: 0.10.0
libtpu: 0.0.40
codegen_flags: <defaults>
</compile_context>

<pallas_src>
import jax
import jax.numpy as jnp
from jax.experimental import pallas as pl
from jax.experimental.pallas import tpu as pltpu

# ------------------------- static configuration ----------------------------
BATCH = 2
IN_STEPS = 8
NUM_NODES = 16
INPUT_DIM = 1            # raw feature channels projected (kernel assumes 1)
N_CHANNELS = 3           # raw feature + tod + dow channels in x
INPUT_EMB_DIM = 24
TOD_EMB_DIM = 24
DOW_EMB_DIM = 8
STEPS_PER_DAY = 48
SPATIAL_EMB_DIM = 16
ADAPTIVE_EMB_DIM = 8

D_TOTAL = (INPUT_EMB_DIM + TOD_EMB_DIM + DOW_EMB_DIM
           + SPATIAL_EMB_DIM + ADAPTIVE_EMB_DIM)              # 80

# output-lane offset of each feature group
COL_INPUT = 0
COL_TOD = COL_INPUT + INPUT_EMB_DIM                           # 24
COL_DOW = COL_TOD + TOD_EMB_DIM                               # 48
COL_SPATIAL = COL_DOW + DOW_EMB_DIM                           # 56
COL_ADAPTIVE = COL_SPATIAL + SPATIAL_EMB_DIM                  # 72

# selector (matmul K axis) layout
SEL_RAW = 0                                                   # raw feature value
SEL_BIAS = 1                                                  # constant 1.0 -> bias row
SEL_TOD = 2                                                   # tod one-hot: cols [2, 50)
SEL_DOW = SEL_TOD + STEPS_PER_DAY                             # 50, dow one-hot: [50, 57)
SEL_NODE = SEL_DOW + 7                                        # 57, node one-hot: [57, 73)
K_TOTAL = SEL_NODE + NUM_NODES                                # 73

ROWS = BATCH * IN_STEPS * NUM_NODES                           # 256 flattened rows
ROWS_PER_BATCH = IN_STEPS * NUM_NODES                         # 128

assert INPUT_DIM == 1
assert NUM_NODES & (NUM_NODES - 1) == 0                       # power of two (row & mask)


def _num_tensorcores() -> int:
    """Dual-TC chips (v7x) get 2 parallel blocks; single-TC chips get 1."""
    try:
        kind = jax.devices()[0].device_kind.lower()
    except Exception:
        return 1
    return 2 if "v7" in kind else 1


GRID = min(_num_tensorcores(), BATCH)                         # 1 on v5e/v6e, 2 on v7x
ROWS_PER_BLOCK = ROWS // GRID                                 # 256 or 128


# ------------------------------- kernel ------------------------------------
def feature_embedding_kernel(x_ref, tbl_ref, adp_ref, o_ref):
    rows = x_ref.shape[0]
    x = x_ref[...]                                            # (rows, 3)

    # Integer tod / dow indices (truncating cast == PyTorch .long()); clamped
    # so an edge fraction (e.g. tod == 1.0) cannot alias into another segment
    # of the fused table.
    tod_col = jnp.clip((x[:, 1:2] * STEPS_PER_DAY).astype(jnp.int32),
                       0, STEPS_PER_DAY - 1) + SEL_TOD        # (rows, 1)
    dow_col = jnp.clip((x[:, 2:3] * 7.0).astype(jnp.int32), 0, 6) + SEL_DOW

    col = jax.lax.broadcasted_iota(jnp.int32, (rows, K_TOTAL), 1)
    row = jax.lax.broadcasted_iota(jnp.int32, (rows, K_TOTAL), 0)
    node_col = (row & (NUM_NODES - 1)) + SEL_NODE             # row % num_nodes

    onehot = ((col == SEL_BIAS) | (col == tod_col) | (col == dow_col)
              | (col == node_col)).astype(jnp.float32)
    # Raw feature value rides in selector column 0 (one-hot is 0 there).
    selector = jnp.where(col == SEL_RAW, x[:, 0:1], onehot)   # (rows, 73)

    # Single MXU pass: projection + bias + tod + dow + spatial, lane-positioned.
    emb = jnp.dot(selector, tbl_ref[...], preferred_element_type=jnp.float32)

    # Adaptive embedding is pre-padded to lanes 72:80 -> one add, one store.
    o_ref[...] = emb + adp_ref[...]


# ---------------------- one-time parameter preparation ----------------------
def build_fused_params(w_in, b_in, tod_table, dow_table, node_emb, adaptive_emb):
    """Hoisted out of the per-call path: build the (73, 80) fused block table
    and the (ROWS, 80) zero-padded / batch-tiled adaptive embedding."""
    tbl = jnp.zeros((K_TOTAL, D_TOTAL), jnp.float32)
    tbl = tbl.at[SEL_RAW, COL_INPUT:COL_INPUT + INPUT_EMB_DIM].set(w_in.reshape(-1))
    tbl = tbl.at[SEL_BIAS, COL_INPUT:COL_INPUT + INPUT_EMB_DIM].set(b_in.reshape(-1))
    tbl = tbl.at[SEL_TOD:SEL_TOD + STEPS_PER_DAY,
                 COL_TOD:COL_TOD + TOD_EMB_DIM].set(tod_table)
    tbl = tbl.at[SEL_DOW:SEL_DOW + 7,
                 COL_DOW:COL_DOW + DOW_EMB_DIM].set(dow_table)
    tbl = tbl.at[SEL_NODE:SEL_NODE + NUM_NODES,
                 COL_SPATIAL:COL_SPATIAL + SPATIAL_EMB_DIM].set(node_emb)

    adp = jnp.zeros((ROWS_PER_BATCH, D_TOTAL), jnp.float32)
    adp = adp.at[:, COL_ADAPTIVE:].set(
        adaptive_emb.reshape(ROWS_PER_BATCH, ADAPTIVE_EMB_DIM))
    adp = jnp.tile(adp, (BATCH, 1))                           # (ROWS, 80)
    return tbl, adp


# ------------------------------ wrapper -------------------------------------
@jax.jit
def feature_embedding(x, fused_tbl, adp_tiled):
    B, T, N, C = x.shape
    x_flat = x.reshape(B * T * N, C)

    out_flat = pl.pallas_call(
        feature_embedding_kernel,
        out_shape=jax.ShapeDtypeStruct((B * T * N, D_TOTAL), jnp.float32),
        grid_spec=pltpu.PrefetchScalarGridSpec(
            num_scalar_prefetch=0,
            grid=(GRID,),
            in_specs=[
                # flattened x rows for this block
                pl.BlockSpec((ROWS_PER_BLOCK, N_CHANNELS), lambda g: (g, 0)),
                # fused block table (full, replicated across blocks)
                pl.BlockSpec((K_TOTAL, D_TOTAL), lambda g: (0, 0)),
                # pre-padded adaptive embedding rows for this block
                pl.BlockSpec((ROWS_PER_BLOCK, D_TOTAL), lambda g: (g, 0)),
            ],
            out_specs=pl.BlockSpec((ROWS_PER_BLOCK, D_TOTAL), lambda g: (g, 0)),
        ),
        compiler_params=pltpu.CompilerParams(
            dimension_semantics=("parallel",)),
    )(x_flat, fused_tbl, adp_tiled)

    return out_flat.reshape(B, T, N, D_TOTAL)


# --------------------------- pure-JAX reference ------------------------------
def feature_embedding_ref(x, w_in, b_in, tod_table, dow_table, node_emb, adaptive_emb):
    B, T, N, _ = x.shape
    tod = (x[..., 1] * STEPS_PER_DAY).astype(jnp.int32)
    dow = (x[..., 2] * 7).astype(jnp.int32)
    proj = x[..., :INPUT_DIM] @ w_in + b_in.reshape(-1)
    spatial = jnp.broadcast_to(node_emb, (B, T, N, SPATIAL_EMB_DIM))
    adp = jnp.broadcast_to(adaptive_emb, (B, T, N, ADAPTIVE_EMB_DIM))
    return jnp.concatenate(
        [proj, tod_table[tod], dow_table[dow], spatial, adp], axis=-1)


# --------------------------------- main --------------------------------------
if __name__ == "__main__":
    key = jax.random.PRNGKey(0)
    k_feat, k_tod, k_dow, k_w, k_b, k_tt, k_dt, k_ne, k_ae = jax.random.split(key, 9)

    # x: channel 0 = raw feature, channel 1 = tod fraction, channel 2 = dow fraction.
    raw = jax.random.normal(k_feat, (BATCH, IN_STEPS, NUM_NODES, 1), jnp.float32)
    tod_int = jax.random.randint(k_tod, (BATCH, IN_STEPS, NUM_NODES, 1), 0, STEPS_PER_DAY)
    dow_int = jax.random.randint(k_dow, (BATCH, IN_STEPS, NUM_NODES, 1), 0, 7)
    x = jnp.concatenate(
        [raw,
         tod_int.astype(jnp.float32) / STEPS_PER_DAY,
         dow_int.astype(jnp.float32) / 7.0],
        axis=-1)                                             # (B, T, N, 3)

    # Deterministic synthetic parameters (no checkpoint load).
    w_in = jax.random.normal(k_w, (INPUT_DIM, INPUT_EMB_DIM), jnp.float32) * 0.1
    b_in = jax.random.normal(k_b, (1, INPUT_EMB_DIM), jnp.float32) * 0.01
    tod_table = jax.random.normal(k_tt, (STEPS_PER_DAY, TOD_EMB_DIM), jnp.float32)
    dow_table = jax.random.normal(k_dt, (7, DOW_EMB_DIM), jnp.float32)
    node_emb = jax.random.normal(k_ne, (NUM_NODES, SPATIAL_EMB_DIM), jnp.float32)
    adaptive_emb = jax.random.normal(
        k_ae, (IN_STEPS, NUM_NODES, ADAPTIVE_EMB_DIM), jnp.float32)

    # One-time parameter prep (hoisted out of the per-call path).
    fused_tbl, adp_tiled = build_fused_params(
        w_in, b_in, tod_table, dow_table, node_emb, adaptive_emb)
    fused_tbl = jax.block_until_ready(fused_tbl)
    adp_tiled = jax.block_until_ready(adp_tiled)

    out = feature_embedding(x, fused_tbl, adp_tiled)
    out = jax.block_until_ready(out)

    ref = feature_embedding_ref(x, w_in, b_in, tod_table, dow_table, node_emb,
                                adaptive_emb)
    assert out.shape == (BATCH, IN_STEPS, NUM_NODES, D_TOTAL), out.shape
    assert jnp.allclose(out, ref, atol=3e-5, rtol=1e-5), "mismatch vs reference"

    print("KERNEL_OK")
</pallas_src>

<mosaic_0001>
module attributes {stable_mosaic.version = 11 : i64} {
  func.func @feature_embedding_kernel(%arg0: i32, %arg1: memref<256x3xf32, #tpu.memory_space<vmem>>, %arg2: memref<73x80xf32, #tpu.memory_space<vmem>>, %arg3: memref<256x80xf32, #tpu.memory_space<vmem>>, %arg4: memref<256x80xf32, #tpu.memory_space<vmem>>) attributes {dimension_semantics = [#tpu.dimension_semantics<parallel>], iteration_bounds = array<i64: 1>, scalar_prefetch = 0 : i64, scratch_operands = 0 : i64, tpu.core_type = #tpu.core_type<tc>, window_params = [{transform_indices = @transform_0, window_bounds = array<i64: 256, 3>}, {pipeline_mode = #tpu.pipeline_mode<synchronous>, transform_indices = @transform_1, window_bounds = array<i64: 73, 80>}, {transform_indices = @transform_2, window_bounds = array<i64: 256, 80>}, {transform_indices = @transform_3, window_bounds = array<i64: 256, 80>}]} {
    %c0 = arith.constant 0 : index
    %c0_0 = arith.constant 0 : index
    %0 = vector.load %arg1[%c0, %c0_0] : memref<256x3xf32, #tpu.memory_space<vmem>>, vector<256x3xf32>
    %1 = vector.extract_strided_slice %0 {offsets = [0, 1], sizes = [256, 1], strides = [1, 1]} : vector<256x3xf32> to vector<256x1xf32>
    %cst = arith.constant 4.800000e+01 : f32
    %2 = vector.broadcast %cst : f32 to vector<256x1xf32>
    %3 = arith.mulf %1, %2 : vector<256x1xf32>
    %4 = arith.fptosi %3 : vector<256x1xf32> to vector<256x1xi32>
    %c0_i32 = arith.constant 0 : i32
    %c47_i32 = arith.constant 47 : i32
    %5 = vector.broadcast %c0_i32 : i32 to vector<256x1xi32>
    %6 = arith.maxsi %5, %4 : vector<256x1xi32>
    %7 = vector.broadcast %c47_i32 : i32 to vector<256x1xi32>
    %8 = arith.minsi %7, %6 : vector<256x1xi32>
    %c2_i32 = arith.constant 2 : i32
    %9 = vector.broadcast %c2_i32 : i32 to vector<256x1xi32>
    %10 = arith.addi %8, %9 : vector<256x1xi32>
    %11 = vector.extract_strided_slice %0 {offsets = [0, 2], sizes = [256, 1], strides = [1, 1]} : vector<256x3xf32> to vector<256x1xf32>
    %cst_1 = arith.constant 7.000000e+00 : f32
    %12 = vector.broadcast %cst_1 : f32 to vector<256x1xf32>
    %13 = arith.mulf %11, %12 : vector<256x1xf32>
    %14 = arith.fptosi %13 : vector<256x1xf32> to vector<256x1xi32>
    %c0_i32_2 = arith.constant 0 : i32
    %c6_i32 = arith.constant 6 : i32
    %15 = vector.broadcast %c0_i32_2 : i32 to vector<256x1xi32>
    %16 = arith.maxsi %15, %14 : vector<256x1xi32>
    %17 = vector.broadcast %c6_i32 : i32 to vector<256x1xi32>
    %18 = arith.minsi %17, %16 : vector<256x1xi32>
    %c50_i32 = arith.constant 50 : i32
    %19 = vector.broadcast %c50_i32 : i32 to vector<256x1xi32>
    %20 = arith.addi %18, %19 : vector<256x1xi32>
    %21 = tpu.iota {dimensions = array<i32: 1>} : vector<256x73xi32>
    %22 = tpu.iota {dimensions = array<i32: 0>} : vector<256x73xi32>
    %c15_i32 = arith.constant 15 : i32
    %23 = vector.broadcast %c15_i32 : i32 to vector<256x73xi32>
    %24 = arith.andi %22, %23 : vector<256x73xi32>
    %c57_i32 = arith.constant 57 : i32
    %25 = vector.broadcast %c57_i32 : i32 to vector<256x73xi32>
    %26 = arith.addi %24, %25 : vector<256x73xi32>
    %c1_i32 = arith.constant 1 : i32
    %27 = vector.broadcast %c1_i32 : i32 to vector<256x73xi32>
    %28 = arith.cmpi eq, %21, %27 : vector<256x73xi32>
    %29 = vector.broadcast %10 : vector<256x1xi32> to vector<256x73xi32>
    %30 = arith.cmpi eq, %21, %29 : vector<256x73xi32>
    %31 = arith.ori %28, %30 : vector<256x73xi1>
    %32 = vector.broadcast %20 : vector<256x1xi32> to vector<256x73xi32>
    %33 = arith.cmpi eq, %21, %32 : vector<256x73xi32>
    %34 = arith.ori %31, %33 : vector<256x73xi1>
    %35 = arith.cmpi eq, %21, %26 : vector<256x73xi32>
    %36 = arith.ori %34, %35 : vector<256x73xi1>
    %37 = arith.extui %36 : vector<256x73xi1> to vector<256x73xi32>
    %38 = arith.sitofp %37 : vector<256x73xi32> to vector<256x73xf32>
    %c0_i32_3 = arith.constant 0 : i32
    %39 = vector.broadcast %c0_i32_3 : i32 to vector<256x73xi32>
    %40 = arith.cmpi eq, %21, %39 : vector<256x73xi32>
    %41 = vector.extract_strided_slice %0 {offsets = [0, 0], sizes = [256, 1], strides = [1, 1]} : vector<256x3xf32> to vector<256x1xf32>
    %42 = vector.shape_cast %41 : vector<256x1xf32> to vector<256x1xf32>
    %43 = vector.broadcast %42 : vector<256x1xf32> to vector<256x73xf32>
    %44 = arith.select %40, %43, %38 : vector<256x73xi1>, vector<256x73xf32>
    %c0_4 = arith.constant 0 : index
    %c0_5 = arith.constant 0 : index
    %45 = vector.load %arg2[%c0_4, %c0_5] : memref<73x80xf32, #tpu.memory_space<vmem>>, vector<73x80xf32>
    %cst_6 = arith.constant dense<0.000000e+00> : vector<256x80xf32>
    %46 = tpu.matmul %44, %45, %cst_6 {dimension_numbers = #tpu.dot_dimension_numbers<[1], [0], [0], [1], [0, 0, 1, 1], [], []>} : vector<256x73xf32>, vector<73x80xf32>, vector<256x80xf32> -> vector<256x80xf32>
    %c0_7 = arith.constant 0 : index
    %c0_8 = arith.constant 0 : index
    %47 = vector.load %arg3[%c0_7, %c0_8] : memref<256x80xf32, #tpu.memory_space<vmem>>, vector<256x80xf32>
    %48 = arith.addf %46, %47 : vector<256x80xf32>
    %c0_9 = arith.constant 0 : index
    %c0_10 = arith.constant 0 : index
    %49 = vector.load %arg4[%c0_9, %c0_10] : memref<256x80xf32, #tpu.memory_space<vmem>>, vector<256x80xf32>
    tpu.vector_store %arg4[%c0_9, %c0_10], %48 {strides = array<i32>} : memref<256x80xf32, #tpu.memory_space<vmem>>, vector<256x80xf32>,
    return
  }
  func.func @transform_0(%arg0: i32) -> (i32, i32) {
    %c0_i32 = arith.constant 0 : i32
    %c0_i32_0 = arith.constant 0 : i32
    return %arg0, %c0_i32 : i32, i32
  }
  func.func @transform_1(%arg0: i32) -> (i32, i32) {
    %c0_i32 = arith.constant 0 : i32
    %c0_i32_0 = arith.constant 0 : i32
    %c0_i32_1 = arith.constant 0 : i32
    return %c0_i32, %c0_i32_0 : i32, i32
  }
  func.func @transform_2(%arg0: i32) -> (i32, i32) {
    %c0_i32 = arith.constant 0 : i32
    %c0_i32_0 = arith.constant 0 : i32
    return %arg0, %c0_i32 : i32, i32
  }
  func.func @transform_3(%arg0: i32) -> (i32, i32) {
    %c0_i32 = arith.constant 0 : i32
    %c0_i32_0 = arith.constant 0 : i32
    return %arg0, %c0_i32 : i32, i32
  }
}

</mosaic_0001>

<bundles_post_ra>
// kernel: feature_embedding.1
= control target key start
LH: loop header
LB: loop body
LE: loop exit
PB: predicated region body
PF: predicated region fallthrough
CT: control target
= control target key end

     0   :  { %v2075_v3 = vmov 1   ;;  %s3241_s0 = inlined_call_operand.vmem [shape: f32[256,3], index: 0, kind: input, shape index: {}]   ;;  %s3242_s1 = inlined_call_operand.vmem [shape: f32[73,80], index: 1, kind: input, shape index: {}]   ;;  %s3243_s2 = inlined_call_operand.vmem [shape: f32[256,80], index: 2, kind: input, shape index: {}]   ;;  %s3244_s3 = inlined_call_operand.hbm [shape: f32[256,80], index: 3, kind: output, shape index: {}]  }
   0x1   :  { %v2106_v0 = vld [vmem:[%s3241_s0 + $0x10] sm:$0xff]  ;;  %v2111_v1 = vld [vmem:[%s3241_s0] sm:$0xff]  ;;  %v2116_v2 = vld [vmem:[%s3241_s0 + $0x18] sm:$0xff]  ;;  %1997 = vset.pattern.permute.xlu1 %v2075_v3  ;;  %1996 = vset.pattern.permute.xlu0 %v2075_v3 }
   0x2   :  { %v49_v4 = vmul.f32 48.0, %v2106_v0  ;;  %v47_v5 = vmul.f32 48.0, %v2111_v1  ;;  %v50_v6 = vmul.f32 48.0, %v2116_v2  ;;  %v2126_v7 = vld [vmem:[%s3241_s0 + $0x8] sm:$0xff]  ;;  %v2136_v9 = vld [vmem:[%s3241_s0 + $0x20] sm:$0xff]  ;;  %v2144_v13 = vld [vmem:[%s3241_s0 + $0x38] sm:$0xff] }
   0x3   :  { %v2131_v8 = vld [vmem:[%s3241_s0 + $0x28] sm:$0xff]  ;;  %v48_v10 = vmul.f32 48.0, %v2126_v7  ;;  %v51_v12 = vmul.f32 48.0, %v2136_v9  ;;  %v2149_v14 = vld [vmem:[%s3241_s0 + $0x30] sm:$0xff]  ;;  %v54_v18 = vmul.f32 48.0, %v2144_v13 }
   0x4   :  { %v52_v11 = vmul.f32 48.0, %v2131_v8  ;;  %v1864_v15 = vtrunc.f32 %v49_v4  ;;  %v1860_v16 = vtrunc.f32 %v47_v5  ;;  %v1866_v17 = vtrunc.f32 %v50_v6 }
   0x5   :  { %v1862_v19 = vtrunc.f32 %v48_v10  ;;  %v1868_v21 = vtrunc.f32 %v51_v12  ;;  %v53_v22 = vmul.f32 48.0, %v2149_v14  ;;  %v1874_v26 = vtrunc.f32 %v54_v18 }
   0x6   :  { %v1870_v20 = vtrunc.f32 %v52_v11  ;;  %v1865_v23 = vcvt.f32.s32 %v1864_v15  ;;  %v1861_v24 = vcvt.f32.s32 %v1860_v16  ;;  %v1867_v25 = vcvt.f32.s32 %v1866_v17 }
   0x7   :  { %v1863_v27 = vcvt.f32.s32 %v1862_v19  ;;  %v1869_v29 = vcvt.f32.s32 %v1868_v21  ;;  %v1872_v30 = vtrunc.f32 %v53_v22  ;;  %v1875_v31 = vcvt.f32.s32 %v1874_v26 }
   0x8   :  { %v1871_v28 = vcvt.f32.s32 %v1870_v20  ;;  %vm115_vm0 = vcmp.gt.s32.totalorder %v1865_v23, 0  ;;  %vm111_vm1 = vcmp.gt.s32.totalorder %v1861_v24, 0  ;;  %vm117_vm2 = vcmp.gt.s32.totalorder %v1867_v25, 0 }
   0x9   :  { %v116_v32 = vsel %vm115_vm0, %v1865_v23, 0  ;;  %v112_v33 = vsel %vm111_vm1, %v1861_v24, 0  ;;  %v118_v34 = vsel %vm117_vm2, %v1867_v25, 0  ;;  %vm113_vm3 = vcmp.gt.s32.totalorder %v1863_v27, 0 }
   0xa   :  { %vm179_vm4 = vcmp.lt.s32.totalorder %v116_v32, 47  ;;  %vm175_vm5 = vcmp.lt.s32.totalorder %v112_v33, 47  ;;  %vm181_vm6 = vcmp.lt.s32.totalorder %v118_v34, 47  ;;  %v114_v35 = vsel %vm113_vm3, %v1863_v27, 0 }
   0xb   :  { %v180_v36 = vsel %vm179_vm4, %v116_v32, 47  ;;  %v176_v37 = vsel %vm175_vm5, %v112_v33, 47  ;;  %v182_v38 = vsel %vm181_vm6, %v118_v34, 47  ;;  %vm177_vm7 = vcmp.lt.s32.totalorder %v114_v35, 47 }
   0xc   :  { %8 = vsyncpa [#allocation3], 0  ;;  %v241_v39 = vadd.s32 2, %v180_v36  ;;  %v239_v40 = vadd.s32 2, %v176_v37  ;;  %v242_v41 = vadd.s32 2, %v182_v38  ;;  %v178_v42 = vsel %vm177_vm7, %v114_v35, 47 }
   0xd   :  { %v2156_v43 = vld [vmem:[%s3241_s0 + $0x48] sm:$0xff]  ;;  %v240_v44 = vadd.s32 2, %v178_v42  ;;  %vm121_vm8 = vcmp.gt.s32.totalorder %v1871_v28, 0  ;;  %vm119_vm9 = vcmp.gt.s32.totalorder %v1869_v29, 0  ;;  %vm125_vm10 = vcmp.gt.s32.totalorder %v1875_v31, 0  ;;  %v2161_v49 = vld [vmem:[%s3241_s0 + $0x40] sm:$0xff] }
   0xe   :  { %602 = vperm.xlu1 %1997, %v241_v39   ;;  %596 = vperm.xlu0 %1996, %v239_v40   ;;  %v122_v45 = vsel %vm121_vm8, %v1871_v28, 0  ;;  %v120_v46 = vsel %vm119_vm9, %v1869_v29, 0  ;;  %v126_v47 = vsel %vm125_vm10, %v1875_v31, 0  ;;  %v1873_v48 = vcvt.f32.s32 %v1872_v30  ;;  %v2167_v51 = vld [vmem:[%s3241_s0 + $0x58] sm:$0xff]  ;;  %v25_v52 = vld [vmem:[%s3241_s0 + $0x50] sm:$0xff]  ;;  %v2175_v56 = vld [vmem:[%s3241_s0 + $0x68] sm:$0xff] }
   0xf   :  { %vm185_vm11 = vcmp.lt.s32.totalorder %v122_v45, 47  ;;  %vm183_vm12 = vcmp.lt.s32.totalorder %v120_v46, 47  ;;  %vm189_vm13 = vcmp.lt.s32.totalorder %v126_v47, 47  ;;  %v56_v50 = vmul.f32 48.0, %v2156_v43  ;;  %v2180_v57 = vld [vmem:[%s3241_s0 + $0x60] sm:$0xff]  ;;  %v30_v5 = vld [vmem:[%s3241_s0 + $0x78] sm:$0xff] }
  0x10   :  { %v186_v53 = vsel %vm185_vm11, %v122_v45, 47  ;;  %v184_v54 = vsel %vm183_vm12, %v120_v46, 47  ;;  %v190_v55 = vsel %vm189_vm13, %v126_v47, 47  ;;  %vm123_vm14 = vcmp.gt.s32.totalorder %v1873_v48, 0  ;;  %v2192_v15 = vld [vmem:[%s3241_s0 + $0x70] sm:$0xff]  ;;  %v2198_v39 = vld [vmem:[%s3241_s0 + $0x88] sm:$0xff] }
  0x11   :  { %v244_v58 = vadd.s32 2, %v186_v53  ;;  %v243_v59 = vadd.s32 2, %v184_v54  ;;  %v246_v60 = vadd.s32 2, %v190_v55  ;;  %v124_v61 = vsel %vm123_vm14, %v1873_v48, 0  ;;  %v2203_v45 = vld [vmem:[%s3241_s0 + $0x80] sm:$0xff]  ;;  %v2209_v54 = vld [vmem:[%s3241_s0 + $0x98] sm:$0xff] }
  0x12   :  { %605 = vperm.xlu1 %1997, %v242_v41   ;;  %599 = vperm.xlu0 %1996, %v240_v44   ;;  %vm187_vm15 = vcmp.lt.s32.totalorder %v124_v61, 47  ;;  %v1878_v62 = vtrunc.f32 %v56_v50  ;;  %v55_v63 = vmul.f32 48.0, %v2161_v49  ;;  %v58_v4 = vmul.f32 48.0, %v2167_v51  ;;  %s2080_s21 = smov [#allocation2]  }
  0x13   :  { %v188_v6 = vsel %vm187_vm15, %v124_v61, 47  ;;  %v57_v10 = vmul.f32 48.0, %v25_v52  ;;  %v60_v11 = vmul.f32 48.0, %v2175_v56  ;;  %v59_v12 = vmul.f32 48.0, %v2180_v57  ;;  %s1642_s22 = sshll.u32 %s2080_s21, 4  ;;  %s1643_s22 = int_to_ptr.vmem [resolvable:$true] %s1642_s22 }
  0x14   :  { %v245_v16 = vadd.s32 2, %v188_v6  ;;  %v1879_v17 = vcvt.f32.s32 %v1878_v62  ;;  %v1876_v18 = vtrunc.f32 %v55_v63  ;;  %v1882_v19 = vtrunc.f32 %v58_v4  ;;  %v2216_v6 = vld [vmem:[%s3241_s0 + $0xa0] sm:$0xff]  ;;  %s2051_s23 = scalar_lea.vmem %s1643_s22, 4096  ;;  %p2056_p1 = scmp.lt.s32.totalorder %s1643_s22, %s1643_s22 }
  0x15   :  { %v1880_v20 = vtrunc.f32 %v57_v10  ;;  %v1886_v21 = vtrunc.f32 %v60_v11  ;;  %v1884_v22 = vtrunc.f32 %v59_v12  ;;  %v62_v23 = vmul.f32 48.0, %v30_v5  ;;  %p2052_p0 = scmp.ne.s32.totalorder %s1643_s22, %s2051_s23  ;;  %p2057_p2 = scmp.lt.s32.totalorder %s2051_s23, %s2051_s23 }
  0x16   :  { %611 = vperm.xlu1 %1997, %v244_v58   ;;  %608 = vperm.xlu0 %1996, %v243_v59   ;;  %vm129_vm0 = vcmp.gt.s32.totalorder %v1879_v17, 0  ;;  %v1877_v24 = vcvt.f32.s32 %v1876_v18  ;;  %v1883_v25 = vcvt.f32.s32 %v1882_v19  ;;  %v61_v26 = vmul.f32 48.0, %v2192_v15 }
  0x17   :  { %v130_v27 = vsel %vm129_vm0, %v1879_v17, 0  ;;  %v1881_v28 = vcvt.f32.s32 %v1880_v20  ;;  %v1887_v29 = vcvt.f32.s32 %v1886_v21  ;;  %v1885_v30 = vcvt.f32.s32 %v1884_v22  ;;  %p2058_p3 = por %p2057_p2, %p2056_p1 }
  0x18   :  { %vm193_vm1 = vcmp.lt.s32.totalorder %v130_v27, 47  ;;  %vm127_vm2 = vcmp.gt.s32.totalorder %v1877_v24, 0  ;;  %vm133_vm3 = vcmp.gt.s32.totalorder %v1883_v25, 0  ;;  %v1890_v31 = vtrunc.f32 %v62_v23 }
  0x19   :  { %v194_v32 = vsel %vm193_vm1, %v130_v27, 47  ;;  %v128_v33 = vsel %vm127_vm2, %v1877_v24, 0  ;;  %v134_v34 = vsel %vm133_vm3, %v1883_v25, 0  ;;  %vm131_vm4 = vcmp.gt.s32.totalorder %v1881_v28, 0  ;;  %p2059_p4 = pnand %p2058_p3, %p2052_p0 }
  0x1a   :  { %617 = vperm.xlu1 %1997, %v246_v60   ;;  %614 = vperm.xlu0 %1996, %v245_v16   ;;  %v248_v35 = vadd.s32 2, %v194_v32  ;;  %vm191_vm5 = vcmp.lt.s32.totalorder %v128_v33, 47  ;;  %vm197_vm6 = vcmp.lt.s32.totalorder %v134_v34, 47  ;;  %v132_v36 = vsel %vm131_vm4, %v1881_v28, 0 }
  0x1b   :  { %v192_v37 = vsel %vm191_vm5, %v128_v33, 47  ;;  %v198_v38 = vsel %vm197_vm6, %v134_v34, 47  ;;  %vm195_vm7 = vcmp.lt.s32.totalorder %v132_v36, 47  ;;  %vm137_vm8 = vcmp.gt.s32.totalorder %v1887_v29, 0  ;;  %v2228_v34 = vld [vmem:[%s3241_s0 + $0x90] sm:$0xff] }
  0x1c   :  { %v247_v40 = vadd.s32 2, %v192_v37  ;;  %v250_v41 = vadd.s32 2, %v198_v38  ;;  %v196_v42 = vsel %vm195_vm7, %v132_v36, 47  ;;  %v138_v44 = vsel %vm137_vm8, %v1887_v29, 0 }
  0x1d   :  { %v249_v46 = vadd.s32 2, %v196_v42  ;;  %vm201_vm9 = vcmp.lt.s32.totalorder %v138_v44, 47  ;;  %vm135_vm10 = vcmp.gt.s32.totalorder %v1885_v30, 0  ;;  %v1891_v47 = vcvt.f32.s32 %v1890_v31  ;;  %v2235_v42 = vld [vmem:[%s3241_s0 + $0xc0] sm:$0xff] }
  0x1e   :  { %623 = vperm.xlu1 %1997, %v248_v35   ;;  %620 = vperm.xlu0 %1996, %v247_v40   ;;  %v202_v48 = vsel %vm201_vm9, %v138_v44, 47  ;;  %v136_v50 = vsel %vm135_vm10, %v1885_v30, 0  ;;  %v1888_v52 = vtrunc.f32 %v61_v26  ;;  %v64_v53 = vmul.f32 48.0, %v2198_v39  ;;  %v2223_v30 = vld [vmem:[%s3241_s0 + $0xb8] sm:$0xff] }
  0x1f   :  { %v252_v55 = vadd.s32 2, %v202_v48  ;;  %vm199_vm11 = vcmp.lt.s32.totalorder %v136_v50, 47  ;;  %vm141_vm12 = vcmp.gt.s32.totalorder %v1891_v47, 0  ;;  %v63_v58 = vmul.f32 48.0, %v2203_v45  ;;  %v2241_v48 = vld [vmem:[%s3241_s0 + $0xd8] sm:$0xff] }
  0x20   :  { %v200_v59 = vsel %vm199_vm11, %v136_v50, 47  ;;  %v142_v60 = vsel %vm141_vm12, %v1891_v47, 0  ;;  %v1889_v61 = vcvt.f32.s32 %v1888_v52  ;;  %v1894_v62 = vtrunc.f32 %v64_v53 }
  0x21   :  { %v251_v63 = vadd.s32 2, %v200_v59  ;;  %vm205_vm13 = vcmp.lt.s32.totalorder %v142_v60, 47  ;;  %v1892_v4 = vtrunc.f32 %v63_v58  ;;  %v66_v5 = vmul.f32 48.0, %v2209_v54 }
  0x22   :  { %629 = vperm.xlu1 %1997, %v250_v41   ;;  %626 = vperm.xlu0 %1996, %v249_v46   ;;  %v206_v10 = vsel %vm205_vm13, %v142_v60, 47  ;;  %vm139_vm14 = vcmp.gt.s32.totalorder %v1889_v61, 0  ;;  %v1895_v11 = vcvt.f32.s32 %v1894_v62  ;;  %v287_v12 = vmul.f32 7.0, %v2203_v45 }
  0x23   :  { %v254_v16 = vadd.s32 2, %v206_v10  ;;  %v140_v17 = vsel %vm139_vm14, %v1889_v61, 0  ;;  %v1893_v18 = vcvt.f32.s32 %v1892_v4  ;;  %v1898_v19 = vtrunc.f32 %v66_v5 }
  0x24   :  { %vm203_vm15 = vcmp.lt.s32.totalorder %v140_v17, 47  ;;  %vm145_vm0 = vcmp.gt.s32.totalorder %v1895_v11, 0  ;;  %v1956_v20 = vtrunc.f32 %v287_v12  ;;  %v67_v21 = vmul.f32 48.0, %v2216_v6 }
  0x25   :  { %v204_v22 = vsel %vm203_vm15, %v140_v17, 47  ;;  %v146_v23 = vsel %vm145_vm0, %v1895_v11, 0  ;;  %vm143_vm1 = vcmp.gt.s32.totalorder %v1893_v18, 0  ;;  %v1899_v24 = vcvt.f32.s32 %v1898_v19 }
  0x26   :  { %635 = vperm.xlu1 %1997, %v252_v55   ;;  %632 = vperm.xlu0 %1996, %v251_v63   ;;  %v253_v25 = vadd.s32 2, %v204_v22  ;;  %vm209_vm2 = vcmp.lt.s32.totalorder %v146_v23, 47  ;;  %v144_v26 = vsel %vm143_vm1, %v1893_v18, 0  ;;  %v1957_v27 = vcvt.f32.s32 %v1956_v20 }
  0x27   :  { %v210_v28 = vsel %vm209_vm2, %v146_v23, 47  ;;  %vm207_vm3 = vcmp.lt.s32.totalorder %v144_v26, 47  ;;  %vm149_vm4 = vcmp.gt.s32.totalorder %v1899_v24, 0  ;;  %v1900_v29 = vtrunc.f32 %v67_v21 }
  0x28   :  { %v256_v31 = vadd.s32 2, %v210_v28  ;;  %v208_v32 = vsel %vm207_vm3, %v144_v26, 47  ;;  %v150_v33 = vsel %vm149_vm4, %v1899_v24, 0  ;;  %vm367_vm5 = vcmp.gt.s32.totalorder %v1957_v27, 0  ;;  %v2251_v26 = vld [vmem:[%s3241_s0 + $0xe0] sm:$0xff] }
  0x29   :  { %v255_v35 = vadd.s32 2, %v208_v32  ;;  %vm213_vm6 = vcmp.lt.s32.totalorder %v150_v33, 47  ;;  %v368_v36 = vsel %vm367_vm5, %v1957_v27, 0  ;;  %v1901_v37 = vcvt.f32.s32 %v1900_v29 }
  0x2a   :  { %641 = vperm.xlu1 %1997, %v254_v16   ;;  %638 = vperm.xlu0 %1996, %v253_v25   ;;  %v214_v38 = vsel %vm213_vm6, %v150_v33, 47  ;;  %vm431_vm7 = vcmp.lt.s32.totalorder %v368_v36, 6  ;;  %v272_v40 = vmul.f32 7.0, %v2126_v7  ;;  %v70_v41 = vmul.f32 48.0, %v2223_v30 }
  0x2b   :  { %v258_v44 = vadd.s32 2, %v214_v38  ;;  %v432_v46 = vsel %vm431_vm7, %v368_v36, 6  ;;  %vm151_vm8 = vcmp.gt.s32.totalorder %v1901_v37, 0  ;;  %v65_v47 = vmul.f32 48.0, %v2228_v34 }
  0x2c   :  { %v479_v50 = vadd.s32 50, %v432_v46  ;;  %v152_v52 = vsel %vm151_vm8, %v1901_v37, 0  ;;  %v1926_v53 = vtrunc.f32 %v272_v40  ;;  %v1906_v55 = vtrunc.f32 %v70_v41 }
  0x2d   :  { %vm215_vm9 = vcmp.lt.s32.totalorder %v152_v52, 47  ;;  %v1896_v58 = vtrunc.f32 %v65_v47  ;;  %v71_v59 = vmul.f32 48.0, %v2235_v42  ;;  %v273_v60 = vmul.f32 7.0, %v2106_v0 }
  0x2e   :  { %647 = vperm.xlu1 %1997, %v256_v31   ;;  %644 = vperm.xlu0 %1996, %v255_v35   ;;  %v216_v61 = vsel %vm215_vm9, %v152_v52, 47  ;;  %v1927_v62 = vcvt.f32.s32 %v1926_v53  ;;  %v1907_v63 = vcvt.f32.s32 %v1906_v55  ;;  %v74_v4 = vmul.f32 48.0, %v2241_v48  ;;  %v2256_v31 = vld [vmem:[%s3241_s0 + $0xf8] sm:$0xff] }
  0x2f   :  { %v259_v5 = vadd.s32 2, %v216_v61  ;;  %v1897_v10 = vcvt.f32.s32 %v1896_v58  ;;  %v1908_v11 = vtrunc.f32 %v71_v59  ;;  %v1928_v12 = vtrunc.f32 %v273_v60 }
  0x30   :  { %vm337_vm10 = vcmp.gt.s32.totalorder %v1927_v62, 0  ;;  %vm157_vm11 = vcmp.gt.s32.totalorder %v1907_v63, 0  ;;  %v1914_v16 = vtrunc.f32 %v74_v4  ;;  %v289_v17 = vmul.f32 7.0, %v2228_v34 }
  0x31   :  { %v338_v18 = vsel %vm337_vm10, %v1927_v62, 0  ;;  %v158_v19 = vsel %vm157_vm11, %v1907_v63, 0  ;;  %vm147_vm12 = vcmp.gt.s32.totalorder %v1897_v10, 0  ;;  %v1909_v20 = vcvt.f32.s32 %v1908_v11 }
  0x32   :  { %v2076_v21 = vmov 2   ;;  %653 = vperm.xlu0 %1996, %v258_v44   ;;  %vm401_vm13 = vcmp.lt.s32.totalorder %v338_v18, 6  ;;  %vm221_vm14 = vcmp.lt.s32.totalorder %v158_v19, 47  ;;  %v148_v22 = vsel %vm147_vm12, %v1897_v10, 0 }
  0x33   :  { %1998 = vset.pattern.permute.xlu1 %v2076_v21  ;;  %v1929_v23 = vcvt.f32.s32 %v1928_v12  ;;  %v402_v24 = vsel %vm401_vm13, %v338_v18, 6  ;;  %v222_v25 = vsel %vm221_vm14, %v158_v19, 47  ;;  %vm211_vm15 = vcmp.lt.s32.totalorder %v148_v22, 47 }
  0x34   :  { %804 = vperm.xlu1 %1998, %v479_v50   ;;  %vm159_vm0 = vcmp.gt.s32.totalorder %v1909_v20, 0  ;;  %v464_v27 = vadd.s32 50, %v402_v24  ;;  %v212_v28 = vsel %vm211_vm15, %v148_v22, 47  ;;  %v262_v32 = vadd.s32 2, %v222_v25 }
  0x35   :  { %v160_v29 = vsel %vm159_vm0, %v1909_v20, 0  ;;  %vm339_vm2 = vcmp.gt.s32.totalorder %v1929_v23, 0  ;;  %v1915_v33 = vcvt.f32.s32 %v1914_v16  ;;  %v1960_v37 = vtrunc.f32 %v289_v17  ;;  %v2268_v20 = vld [vmem:[%s3241_s0 + $0xa8] sm:$0xff] }
  0x36   :  { %vm223_vm1 = vcmp.lt.s32.totalorder %v160_v29, 47  ;;  %656 = vperm.xlu0 %1996, %v259_v5   ;;  %v340_v36 = vsel %vm339_vm2, %v1929_v23, 0  ;;  %v75_v38 = vmul.f32 48.0, %v2251_v26  ;;  %v257_v40 = vadd.s32 2, %v212_v28 }
  0x37   :  { %v224_v35 = vsel %vm223_vm1, %v160_v29, 47  ;;  %vm403_vm3 = vcmp.lt.s32.totalorder %v340_v36, 6  ;;  %vm165_vm4 = vcmp.gt.s32.totalorder %v1915_v33, 0  ;;  %v78_v41 = vmul.f32 48.0, %v2256_v31 }
  0x38   :  { %759 = vperm.xlu1 %1998, %v464_v27   ;;  %v404_v44 = vsel %vm403_vm3, %v340_v36, 6  ;;  %v166_v46 = vsel %vm165_vm4, %v1915_v33, 0  ;;  %v1961_v47 = vcvt.f32.s32 %v1960_v37  ;;  %v1916_v50 = vtrunc.f32 %v75_v38 }
  0x39   :  { %v263_v52 = vadd.s32 2, %v224_v35  ;;  %vm229_vm5 = vcmp.lt.s32.totalorder %v166_v46, 47  ;;  %v1922_v53 = vtrunc.f32 %v78_v41  ;;  %v274_v55 = vmul.f32 7.0, %v2116_v2 }
  0x3a   :  { %665 = vperm.xlu0 %1996, %v262_v32   ;;  %v230_v58 = vsel %vm229_vm5, %v166_v46, 47  ;;  %vm371_vm6 = vcmp.gt.s32.totalorder %v1961_v47, 0  ;;  %v1917_v59 = vcvt.f32.s32 %v1916_v50  ;;  %v271_v60 = vmul.f32 7.0, %v2111_v1 }
  0x3b   :  { %v465_v61 = vadd.s32 50, %v404_v44  ;;  %v372_v62 = vsel %vm371_vm6, %v1961_v47, 0  ;;  %v1923_v63 = vcvt.f32.s32 %v1922_v53  ;;  %v1930_v4 = vtrunc.f32 %v274_v55 }
  0x3c   :  { %1999 = vset.pattern.permute.xlu1 %v2075_v3  ;;  %vm435_vm7 = vcmp.lt.s32.totalorder %v372_v62, 6  ;;  %vm167_vm8 = vcmp.gt.s32.totalorder %v1917_v59, 0  ;;  %v1924_v5 = vtrunc.f32 %v271_v60  ;;  %v288_v10 = vmul.f32 7.0, %v2198_v39 }
  0x3d   :  { %650 = vperm.xlu1 %1999, %v257_v40   ;;  %v266_v11 = vadd.s32 2, %v230_v58  ;;  %v168_v2 = vsel %vm167_vm8, %v1917_v59, 0  ;;  %vm173_vm9 = vcmp.gt.s32.totalorder %v1923_v63, 0  ;;  %v1931_v12 = vcvt.f32.s32 %v1930_v4 }
  0x3e   :  { %668 = vperm.xlu0 %1996, %v263_v52   ;;  %v436_v16 = vsel %vm435_vm7, %v372_v62, 6  ;;  %vm231_vm10 = vcmp.lt.s32.totalorder %v168_v2, 47  ;;  %v174_v1 = vsel %vm173_vm9, %v1923_v63, 0  ;;  %v1925_v17 = vcvt.f32.s32 %v1924_v5 }
  0x3f   :  { %v232_v18 = vsel %vm231_vm10, %v168_v2, 47  ;;  %vm341_vm11 = vcmp.gt.s32.totalorder %v1931_v12, 0  ;;  %v1958_v19 = vtrunc.f32 %v288_v10  ;;  %vm237_vm12 = vcmp.lt.s32.totalorder %v174_v1, 47 }
  0x40   :  { %vm335_vm13 = vcmp.gt.s32.totalorder %v1925_v17, 0  ;;  %v481_v22 = vadd.s32 50, %v436_v16  ;;  %v342_v23 = vsel %vm341_vm11, %v1931_v12, 0  ;;  %v267_v27 = vadd.s32 2, %v232_v18 }
  0x41   :  { %2000 = vset.pattern.permute.xlu1 %v2076_v21  ;;  %v336_v24 = vsel %vm335_vm13, %v1925_v17, 0  ;;  %v1959_v25 = vcvt.f32.s32 %v1958_v19  ;;  %v290_v28 = vmul.f32 7.0, %v2209_v54  ;;  %v291_v29 = vmul.f32 7.0, %v2216_v6 }
  0x42   :  { %762 = vperm.xlu1 %2000, %v465_v61   ;;  %677 = vperm.xlu0 %1996, %v266_v11   ;;  %v238_v32 = vsel %vm237_vm12, %v174_v1, 47  ;;  %v68_v33 = vmul.f32 48.0, %v2268_v20  ;;  %vm405_vm15 = vcmp.lt.s32.totalorder %v342_v23, 6  ;;  %vm399_vm0 = vcmp.lt.s32.totalorder %v336_v24, 6 }
  0x43   :  { %vm369_vm14 = vcmp.gt.s32.totalorder %v1959_v25, 0  ;;  %v1962_v35 = vtrunc.f32 %v290_v28  ;;  %v1964_v36 = vtrunc.f32 %v291_v29  ;;  %v276_v40 = vmul.f32 7.0, %v2131_v8 }
  0x44   :  { %v370_v37 = vsel %vm369_vm14, %v1959_v25, 0  ;;  %v1902_v38 = vtrunc.f32 %v68_v33  ;;  %v275_v41 = vmul.f32 7.0, %v2136_v9  ;;  %v270_v44 = vadd.s32 2, %v238_v32 }
  0x45   :  { %v1963_v46 = vcvt.f32.s32 %v1962_v35  ;;  %v1965_v47 = vcvt.f32.s32 %v1964_v36  ;;  %v294_v50 = vmul.f32 7.0, %v2223_v30  ;;  %v406_v52 = vsel %vm405_vm15, %v342_v23, 6 }
  0x46   :  { %810 = vperm.xlu1 %2000, %v481_v22   ;;  %680 = vperm.xlu0 %1996, %v267_v27   ;;  %v400_v53 = vsel %vm399_vm0, %v336_v24, 6  ;;  %v1934_v55 = vtrunc.f32 %v276_v40  ;;  %vm433_vm1 = vcmp.lt.s32.totalorder %v370_v37, 6  ;;  %v1903_v58 = vcvt.f32.s32 %v1902_v38 }
  0x47   :  { %vm373_vm2 = vcmp.gt.s32.totalorder %v1963_v46, 0  ;;  %v1932_v59 = vtrunc.f32 %v275_v41  ;;  %v2077_v60 = vmov 0   ;;  %vm375_vm3 = vcmp.gt.s32.totalorder %v1965_v47, 0 }
  0x48   :  { %v374_v61 = vsel %vm373_vm2, %v1963_v46, 0  ;;  %v1935_v8 = vcvt.f32.s32 %v1934_v55  ;;  %v1970_v9 = vtrunc.f32 %v294_v50  ;;  %v295_v62 = vmul.f32 7.0, %v2235_v42  ;;  %v2292_v55 = vld [vmem:[%s3241_s0 + $0xb0] sm:$0xff] }
  0x49   :  { %v466_v63 = vadd.s32 50, %v406_v52  ;;  %v463_v4 = vadd.s32 50, %v400_v53  ;;  %v434_v5 = vsel %vm433_vm1, %v370_v37, 6  ;;  %vm437_vm4 = vcmp.lt.s32.totalorder %v374_v61, 6 }
  0x4a   :  { %2001 = vset.pattern.permute.xlu1 %v2077_v60  ;;  %689 = vperm.xlu0 %1996, %v270_v44   ;;  %v376_v10 = vsel %vm375_vm3, %v1965_v47, 0  ;;  %vm153_vm5 = vcmp.gt.s32.totalorder %v1903_v58, 0  ;;  %v1933_v11 = vcvt.f32.s32 %v1932_v59  ;;  %vm345_vm6 = vcmp.gt.s32.totalorder %v1935_v8, 0 }
  0x4b   :  { %1126 = vperm.xlu1 %2001, %v2203_v45   ;;  %v1971_v2 = vcvt.f32.s32 %v1970_v9  ;;  %v1972_v12 = vtrunc.f32 %v295_v62  ;;  %v280_v16 = vmul.f32 7.0, %v2156_v43  ;;  %v480_v45 = vadd.s32 50, %v434_v5 }
  0x4c   :  { %v438_v1 = vsel %vm437_vm4, %v374_v61, 6  ;;  %vm439_vm7 = vcmp.lt.s32.totalorder %v376_v10, 6  ;;  %v154_v17 = vsel %vm153_vm5, %v1903_v58, 0  ;;  %v346_v18 = vsel %vm345_vm6, %v1935_v8, 0 }
  0x4d   :  { %vm343_vm8 = vcmp.gt.s32.totalorder %v1933_v11, 0  ;;  %v1973_v19 = vcvt.f32.s32 %v1972_v12  ;;  %v1942_v22 = vtrunc.f32 %v280_v16  ;;  %vm381_vm9 = vcmp.gt.s32.totalorder %v1971_v2, 0 }
  0x4e   :  { %2030 = vset.pattern.permute.xlu0 %v2076_v21  ;;  %v440_v23 = vsel %vm439_vm7, %v376_v10, 6  ;;  %vm217_vm10 = vcmp.lt.s32.totalorder %v154_v17, 47  ;;  %v298_v24 = vmul.f32 7.0, %v2241_v48  ;;  %v482_v25 = vadd.s32 50, %v438_v1 }
  0x4f   :  { %2002 = vset.pattern.permute.xlu1 %v2076_v21  ;;  %756 = vperm.xlu0 %2030, %v463_v4   ;;  %vm409_vm11 = vcmp.lt.s32.totalorder %v346_v18, 6  ;;  %v344_v43 = vsel %vm343_vm8, %v1933_v11, 0  ;;  %v292_v27 = vmul.f32 7.0, %v2268_v20  ;;  %v382_v28 = vsel %vm381_vm9, %v1971_v2, 0 }
  0x50   :  { %765 = vperm.xlu1 %2002, %v466_v63   ;;  %vm383_vm12 = vcmp.gt.s32.totalorder %v1973_v19, 0  ;;  %v1943_v29 = vcvt.f32.s32 %v1942_v22  ;;  %v483_v32 = vadd.s32 50, %v440_v23  ;;  %v218_v33 = vsel %vm217_vm10, %v154_v17, 47 }
  0x51   :  { %v410_v35 = vsel %vm409_vm11, %v346_v18, 6  ;;  %vm407_vm13 = vcmp.lt.s32.totalorder %v344_v43, 6  ;;  %v1978_v36 = vtrunc.f32 %v298_v24  ;;  %vm445_vm14 = vcmp.lt.s32.totalorder %v382_v28, 6 }
  0x52   :  { %v384_v48 = vsel %vm383_vm12, %v1973_v19, 0  ;;  %v1966_v37 = vtrunc.f32 %v292_v27  ;;  %v299_v38 = vmul.f32 7.0, %v2251_v26  ;;  %vm353_vm15 = vcmp.gt.s32.totalorder %v1943_v29, 0 }
  0x53   :  { %807 = vperm.xlu0 %2030, %v480_v45   ;;  %v260_v40 = vadd.s32 2, %v218_v33  ;;  %v468_v41 = vadd.s32 50, %v410_v35  ;;  %v446_v44 = vsel %vm445_vm14, %v382_v28, 6  ;;  %vm447_vm0 = vcmp.lt.s32.totalorder %v384_v48, 6  ;;  %v1237_v35 = vld [vmem:[%s3242_s1 + $0x8] sm:$0xff] }
  0x54   :  { %2003 = vset.pattern.permute.xlu1 %v2077_v60  ;;  %v1979_v46 = vcvt.f32.s32 %v1978_v36  ;;  %v354_v47 = vsel %vm353_vm15, %v1943_v29, 0  ;;  %v1967_v50 = vcvt.f32.s32 %v1966_v37  ;;  %v1980_v52 = vtrunc.f32 %v299_v38  ;;  %v1239_v37 = vld [vmem:[%s3242_s1 + $0x18] sm:$0xff] }
  0x55   :  { %1051 = vperm.xlu1 %2003, %v2126_v7   ;;  %v408_v7 = vsel %vm407_vm13, %v344_v43, 6  ;;  %v284_v53 = vmul.f32 7.0, %v2175_v56  ;;  %v486_v26 = vadd.s32 50, %v446_v44  ;;  %v448_v58 = vsel %vm447_vm0, %v384_v48, 6  ;;  %v1238_v48 = vld [vmem:[%s3242_s1 + $0x10] sm:$0xff] }
  0x56   :  { %vm417_vm1 = vcmp.lt.s32.totalorder %v354_v47, 6  ;;  %vm389_vm2 = vcmp.gt.s32.totalorder %v1979_v46, 0  ;;  %v69_v59 = vmul.f32 48.0, %v2292_v55  ;;  %vm377_vm3 = vcmp.gt.s32.totalorder %v1967_v50, 0 }
  0x57   :  { %813 = vperm.xlu0 %2030, %v482_v25   ;;  %v1981_v61 = vcvt.f32.s32 %v1980_v52  ;;  %v1950_v8 = vtrunc.f32 %v284_v53  ;;  %v302_v56 = vmul.f32 7.0, %v2256_v31  ;;  %v487_v9 = vadd.s32 50, %v448_v58 }
  0x58   :  { %v418_v62 = vsel %vm417_vm1, %v354_v47, 6  ;;  %v390_v63 = vsel %vm389_vm2, %v1979_v46, 0  ;;  %v378_v4 = vsel %vm377_vm3, %v1967_v50, 0  ;;  %v1904_v5 = vtrunc.f32 %v69_v59  ;;  %v1241_v47 = vld [vmem:[%s3242_s1 + $0x28] sm:$0xff] }
  0x59   :  { %1131 = vperm.xlu1 %2003, %v2198_v39   ;;  %v467_v39 = vadd.s32 50, %v408_v7  ;;  %vm391_vm4 = vcmp.gt.s32.totalorder %v1981_v61, 0  ;;  %v1951_v10 = vcvt.f32.s32 %v1950_v8  ;;  %v1986_v11 = vtrunc.f32 %v302_v56 }
  0x5a   :  { %v277_v2 = vmul.f32 7.0, %v2149_v14  ;;  %vm453_vm5 = vcmp.lt.s32.totalorder %v390_v63, 6  ;;  %v472_v12 = vadd.s32 50, %v418_v62  ;;  %vm441_vm6 = vcmp.lt.s32.totalorder %v378_v4, 6 }
  0x5b   :  { %816 = vperm.xlu0 %2030, %v483_v32   ;;  %v392_v16 = vsel %vm391_vm4, %v1981_v61, 0  ;;  %v1905_v45 = vcvt.f32.s32 %v1904_v5  ;;  %vm361_vm7 = vcmp.gt.s32.totalorder %v1951_v10, 0  ;;  %v1987_v1 = vcvt.f32.s32 %v1986_v11  ;;  %v1243_v61 = vld [vmem:[%s3242_s1 + $0x38] sm:$0xff] }
  0x5c   :  { %v1936_v17 = vtrunc.f32 %v277_v2  ;;  %v293_v18 = vmul.f32 7.0, %v2292_v55  ;;  %v454_v19 = vsel %vm453_vm5, %v390_v63, 6  ;;  %v442_v22 = vsel %vm441_vm6, %v378_v4, 6  ;;  %v1244_v63 = vld [vmem:[%s3242_s1 + $0x40] sm:$0xff]  ;;  %v1245_v4 = vld [vmem:[%s3242_s1 + $0x48] sm:$0x1] }
  0x5d   :  { %2004 = vset.pattern.permute.xlu1 %v2075_v3  ;;  %vm455_vm8 = vcmp.lt.s32.totalorder %v392_v16, 6  ;;  %v362_v23 = vsel %vm361_vm7, %v1951_v10, 0  ;;  %vm155_vm9 = vcmp.gt.s32.totalorder %v1905_v45, 0  ;;  %v490_v14 = vadd.s32 50, %v454_v19  ;;  %v2036_v2 = vld [vmem:[%s3241_s0] sm:$0xff] }
  0x5e   :  { %659 = vperm.xlu1 %2004, %v260_v40   ;;  %vm397_vm10 = vcmp.gt.s32.totalorder %v1987_v1, 0  ;;  %v1937_v24 = vcvt.f32.s32 %v1936_v17  ;;  %v1968_v25 = vtrunc.f32 %v293_v18  ;;  %v484_v43 = vadd.s32 50, %v442_v22  ;;  %v2038_v22 = vld [vmem:[%s3241_s0 + $0x20] sm:$0xff] }
  0x5f   :  { %771 = vperm.xlu0 %2030, %v468_v41   ;;  %vm425_vm11 = vcmp.lt.s32.totalorder %v362_v23, 6  ;;  %v156_v27 = vsel %vm155_vm9, %v1905_v45, 0  ;;  %v398_v28 = vsel %vm397_vm10, %v1987_v1, 0  ;;  %v278_v36 = vmul.f32 7.0, %v2144_v13  ;;  %v1240_v13 = vld [vmem:[%s3242_s1 + $0x20] sm:$0xff]  ;;  %v2037_v1 = vld [vmem:[%s3241_s0 + $0x18] sm:$0xff] }
  0x60   :  { %vm347_vm12 = vcmp.gt.s32.totalorder %v1937_v24, 0  ;;  %v1969_v32 = vcvt.f32.s32 %v1968_v25  ;;  %v426_v33 = vsel %vm425_vm11, %v362_v23, 6  ;;  %vm219_vm13 = vcmp.lt.s32.totalorder %v156_v27, 47 }
  0x61   :  { %vm461_vm14 = vcmp.lt.s32.totalorder %v398_v28, 6  ;;  %v348_v38 = vsel %vm347_vm12, %v1937_v24, 0  ;;  %v476_v40 = vadd.s32 50, %v426_v33  ;;  %v220_v41 = vsel %vm219_vm13, %v156_v27, 47  ;;  %v2039_v24 = vld [vmem:[%s3241_s0 + $0x38] sm:$0xff] }
  0x62   :  { %2005 = vset.pattern.permute.xlu1 %v2076_v21  ;;  %vm379_vm15 = vcmp.gt.s32.totalorder %v1969_v32, 0  ;;  %v462_v44 = vsel %vm461_vm14, %v398_v28, 6  ;;  %v1832_v46 = vpack.c.bf16 %v1239_v37, %v1238_v48  ;;  %vm411_vm0 = vcmp.lt.s32.totalorder %v348_v38, 6 }
  0x63   :  { %768 = vperm.xlu1 %2005, %v467_v39   ;;  %825 = vperm.xlu0 %2030, %v486_v26   ;;  %v1938_v50 = vtrunc.f32 %v278_v36  ;;  %v261_v52 = vadd.s32 2, %v220_v41  ;;  %v380_v53 = vsel %vm379_vm15, %v1969_v32, 0  ;;  %v494_v39 = vadd.s32 50, %v462_v44 }
  0x64   :  { %v1836_v26 = vpack.c.bf16 %v1241_v47, %v1240_v13  ;;  %v412_v58 = vsel %vm411_vm0, %v348_v38, 6  ;;  %vm443_vm1 = vcmp.lt.s32.totalorder %v380_v53, 6  ;;  %vm1375_vm3 = vcmask 1040384  }
  0x65   :  { %v1939_v59 = vcvt.f32.s32 %v1938_v50  ;;  %v469_v8 = vadd.s32 50, %v412_v58  ;;  %v444_v56 = vsel %vm443_vm1, %v380_v53, 6  ;;  %v1844_v11 = vpack.c.bf16 %v1245_v4, %v1244_v63 }
  0x66   :  { %v485_v5 = vadd.s32 50, %v444_v56  ;;  %vm2078_vm4 = vmmov 1   ;;  %v279_v17 = vmul.f32 7.0, %v2161_v49 }
  0x67   :  { %2006 = vset.pattern.permute.xlu1 %v2077_v60  ;;  %828 = vperm.xlu0 %2030, %v487_v9   ;;  %v2335_v9 = vld [vmem:[%s3241_s0 + $0xc8] sm:$0xff]  ;;  %vm349_vm2 = vcmp.gt.s32.totalorder %v1939_v59, 0  ;;  %vm2349_vm5 = vmpackc.low %vm1375_vm3, %vm2078_vm4 }
  0x68   :  { %1056 = vperm.xlu1 %2006, %v2106_v0   ;;  %v456_v0 = vsel %vm455_vm8, %v392_v16, 6  ;;  %v72_v10 = vmul.f32 48.0, %v2335_v9  ;;  %v1940_v23 = vtrunc.f32 %v279_v17  ;;  %v296_v32 = vmul.f32 7.0, %v2335_v9 }
  0x69   :  { %v491_v29 = vadd.s32 50, %v456_v0 }
  0x6a   :  { %v1910_v45 = vtrunc.f32 %v72_v10  ;;  %v1941_v25 = vcvt.f32.s32 %v1940_v23  ;;  %v1974_v36 = vtrunc.f32 %v296_v32 }
  0x6b   :  { %783 = vperm.xlu0 %2030, %v472_v12   ;;  %v350_v12 = vsel %vm349_vm2, %v1939_v59, 0 }
  0x6c   :  { %1136 = vperm.xlu1 %2006, %v2228_v34   ;;  %v1236_v34 = vld [vmem:[%s3242_s1] sm:$0xff]  ;;  %vm413_vm6 = vcmp.lt.s32.totalorder %v350_v12, 6  ;;  %v1911_v19 = vcvt.f32.s32 %v1910_v45  ;;  %vm351_vm8 = vcmp.gt.s32.totalorder %v1941_v25, 0  ;;  %v1975_v41 = vcvt.f32.s32 %v1974_v36  ;;  %v2470_v36 = vld [vmem:[%s3241_s0 + $0xe8] sm:$0xff] }
  0x6d   :  { %v1828_v7 = vpack.c.bf16 %v1237_v35, %v1236_v34  ;;  %v414_v18 = vsel %vm413_vm6, %v350_v12, 6  ;;  %v352_v33 = vsel %vm351_vm8, %v1941_v25, 0 }
  0x6e   :  { %vm161_vm7 = vcmp.gt.s32.totalorder %v1911_v19, 0  ;;  %vm415_vm10 = vcmp.lt.s32.totalorder %v352_v33, 6  ;;  %vm385_vm11 = vcmp.gt.s32.totalorder %v1975_v41, 0 }
  0x6f   :  { %837 = vperm.xlu0 %2030, %v490_v14   ;;  %1850 = vmatprep.subr.bf16.mxu1 %v1828_v7  ;;  %v470_v14 = vadd.s32 50, %v414_v18  ;;  %v162_v0 = vsel %vm161_vm7, %v1911_v19, 0  ;;  %v386_v50 = vsel %vm385_vm11, %v1975_v41, 0 }
  0x70   :  { %2007 = vset.pattern.permute.xlu1 %v2076_v21  ;;  %1855 = vmatpush3.bf16.msra.mxu1 %v1828_v7  ;;  %vm225_vm9 = vcmp.lt.s32.totalorder %v162_v0, 47  ;;  %vm449_vm12 = vcmp.lt.s32.totalorder %v386_v50, 6 }
  0x71   :  { %819 = vperm.xlu1 %2007, %v484_v43   ;;  %1829 = vmatprep.subr.bf16.mxu0 %v1828_v7  ;;  %v226_v34 = vsel %vm225_vm9, %v162_v0, 47 }
  0x72   :  { %1851 = vmatprep.subr.bf16.mxu1 %v1832_v46  ;;  %1831 = vmatpush3.bf16.msra.mxu0 %v1828_v7  ;;  %v264_v48 = vadd.s32 2, %v226_v34 }
  0x73   :  { %840 = vperm.xlu0 %2030, %v491_v29   ;;  %1833 = vmatprep.subr.bf16.mxu0 %v1832_v46  ;;  %v2040_v29 = vld [vmem:[%s3241_s0 + $0x28] sm:$0xff] }
  0x74   :  { %1856 = vmatpush3.bf16.msra.mxu1 %v1832_v46 }
  0x75   :  { %2008 = vset.pattern.permute.xlu1 %v2077_v60  ;;  %1852 = vmatprep.subr.bf16.mxu1 %v1836_v26 }
  0x76   :  { %1141 = vperm.xlu1 %2008, %v2209_v54   ;;  %v1242_v54 = vld [vmem:[%s3242_s1 + $0x30] sm:$0xff]  ;;  %1835 = vmatpush3.bf16.msra.mxu0 %v1832_v46 }
  0x77   :  { %795 = vperm.xlu0 %2030, %v476_v40   ;;  %v1840_v62 = vpack.c.bf16 %v1243_v61, %v1242_v54  ;;  %1837 = vmatprep.subr.bf16.mxu0 %v1836_v26  ;;  %v416_v40 = vsel %vm415_vm10, %v352_v33, 6  ;;  %v450_v54 = vsel %vm449_vm12, %v386_v50, 6 }
  0x78   :  { %1857 = vmatpush3.bf16.msra.mxu1 %v1836_v26  ;;  %v488_v63 = vadd.s32 50, %v450_v54 }
  0x79   :  { %1853 = vmatprep.subr.bf16.mxu1 %v1840_v62 }
  0x7a   :  { %2009 = vset.pattern.permute.xlu1 %v2075_v3  ;;  %1839 = vmatpush3.bf16.msra.mxu0 %v1836_v26 }
  0x7b   :  { %662 = vperm.xlu1 %2009, %v261_v52   ;;  %849 = vperm.xlu0 %2030, %v494_v39  }
  0x7c   :  { %1858 = vmatpush3.bf16.msra.mxu1 %v1840_v62  ;;  %1841 = vmatprep.subr.bf16.mxu0 %v1840_v62 }
  0x7d   :  { %1854 = vmatprep.subr.msk.bf16.mxu1 %vm2349_vm5, %v1844_v11 }
  0x7e   :  { %1843 = vmatpush3.bf16.msra.mxu0 %v1840_v62 }
  0x7f   :  { %2010 = vset.pattern.permute.xlu1 %v2076_v21  ;;  %2034 = vset.pattern.permute.xlu0 %v2077_v60 }
  0x80   :  { %774 = vperm.xlu1 %2010, %v469_v8   ;;  %1046 = vperm.xlu0 %2034, %v2036_v2  }
  0x81   :  { %1859 = vmatpush3.bf16.msk.msra.mxu1 %vm2349_vm5, %v1844_v11  ;;  %1846 = vmatprep.subr.msk.bf16.mxu0 %vm2349_vm5, %v1844_v11 }
  0x82   :  { %1849 = vmatpush3.bf16.msk.msra.mxu0 %vm2349_vm5, %v1844_v11 }
  0x84   :  { %822 = vperm.xlu1 %2010, %v485_v5   ;;  %1061 = vperm.xlu0 %2034, %v2037_v1   ;;  %v495_v5 = vlaneseq }
  0x86   :  { %v2443_v16 = vand.u32 127, %v495_v5  ;;  %v2451_v19 = vshrl.u32 %v495_v5, 7 }
  0x88   :  { %2011 = vset.pattern.permute.xlu1 %v2077_v60  ;;  %1066 = vperm.xlu0 %2034, %v2038_v22   ;;  %vm3247_vm3 = vcmp.eq.s32.totalorder %v2443_v16, 1 }
  0x89   :  { %1146 = vperm.xlu1 %2011, %v2216_v6  }
  0x8c   :  { %1081 = vperm.xlu0 %2034, %v2039_v24  }
  0x8d   :  { %2012 = vset.pattern.permute.xlu1 %v2076_v21  ;;  %v2374_v6 = vpop.permute.xlu1 %602  ;;  %v2376_v43 = vpop.permute.xlu0 %596 }
  0x8e   :  { %777 = vperm.xlu1 %2012, %v470_v14  }
  0x90   :  { %1086 = vperm.xlu0 %2034, %v2161_v49  }
  0x91   :  { %v2379_v27 = vpop.permute.xlu1 %605  ;;  %v2382_v28 = vpop.permute.xlu0 %599 }
  0x92   :  { %2013 = vset.pattern.permute.xlu1 %v2077_v60  ;;  %vm692_vm1 = vcmp.eq.s32.totalorder %v2443_v16, %v2382_v28  ;;  %v514_v28 = vadd.s32 128, %v2451_v19 }
  0x93   :  { %1071 = vperm.xlu1 %2013, %v2040_v29   ;;  %vm724_vm4 = vmor %vm3247_vm3, %vm692_vm1  ;;  %vm3245_vm1 = vcmask 596992  }
  0x94   :  { %1101 = vperm.xlu0 %2034, %v2167_v51   ;;  %v2402_v51 = vld [vmem:[%s3241_s0 + $0xd0] sm:$0xff] }
  0x95   :  { %v2389_v49 = vpop.permute.xlu1 %611  ;;  %v2391_v35 = vpop.permute.xlu0 %608  ;;  %v73_v7 = vmul.f32 48.0, %v2402_v51  ;;  %v297_v59 = vmul.f32 7.0, %v2402_v51 }
  0x97   :  { %1151 = vperm.xlu1 %2013, %v2268_v20   ;;  %v471_v20 = vadd.s32 50, %v416_v40  ;;  %v1912_v46 = vtrunc.f32 %v73_v7  ;;  %v1976_v62 = vtrunc.f32 %v297_v59  ;;  %v546_v40 = vand.u32 15, %v514_v28 }
  0x98   :  { %1106 = vperm.xlu0 %2034, %v2180_v57   ;;  %v76_v7 = vmul.f32 48.0, %v2470_v36 }
  0x99   :  { %v2395_v37 = vpop.permute.xlu1 %617  ;;  %v2397_v38 = vpop.permute.xlu0 %614  ;;  %v1913_v53 = vcvt.f32.s32 %v1912_v46  ;;  %v1977_v2 = vcvt.f32.s32 %v1976_v62  ;;  %v578_v50 = vadd.s32 57, %v546_v40 }
  0x9b   :  { %2014 = vset.pattern.permute.xlu1 %v2075_v3  ;;  %vm163_vm13 = vcmp.gt.s32.totalorder %v1913_v53, 0  ;;  %vm387_vm0 = vcmp.gt.s32.totalorder %v1977_v2, 0 }
  0x9c   :  { %671 = vperm.xlu1 %2014, %v264_v48   ;;  %1116 = vperm.xlu0 %2034, %v2192_v15   ;;  %v2420_v15 = vld [vmem:[%s3241_s0 + $0x50] sm:$0xff]  ;;  %v164_v4 = vsel %vm163_vm13, %v1913_v53, 0  ;;  %v388_v14 = vsel %vm387_vm0, %v1977_v2, 0  ;;  %vm3246_vm0 = vcmp.eq.s32.totalorder %v2443_v16, 0 }
  0x9d   :  { %v2407_v57 = vpop.permute.xlu1 %623  ;;  %v2409_v44 = vpop.permute.xlu0 %620  ;;  %v281_v52 = vmul.f32 7.0, %v2420_v15  ;;  %vm227_vm15 = vcmp.lt.s32.totalorder %v164_v4, 47  ;;  %vm451_vm6 = vcmp.lt.s32.totalorder %v388_v14, 6 }
  0x9e   :  { %v228_v17 = vsel %vm227_vm15, %v164_v4, 47  ;;  %v452_v34 = vsel %vm451_vm6, %v388_v14, 6  ;;  %v515_v4 = vadd.s32 136, %v2451_v19 }
  0x9f   :  { %v1944_v58 = vtrunc.f32 %v281_v52  ;;  %v265_v23 = vadd.s32 2, %v228_v17 }
  0xa0   :  { %2015 = vset.pattern.permute.xlu1 %v2076_v21  ;;  %1201 = vperm.xlu0 %2034, %v2256_v31   ;;  %v2042_v31 = vld [vmem:[%s3241_s0 + $0x30] sm:$0xff]  ;;  %v547_v17 = vand.u32 15, %v515_v4 }
  0xa1   :  { %780 = vperm.xlu1 %2015, %v471_v20   ;;  %v2413_v13 = vpop.permute.xlu1 %629  ;;  %v2415_v47 = vpop.permute.xlu0 %626  ;;  %v1945_v56 = vcvt.f32.s32 %v1944_v58  ;;  %v489_v20 = vadd.s32 50, %v452_v34  ;;  %v2044_v58 = vld [vmem:[%s3241_s0 + $0x60] sm:$0xff] }
  0xa2   :  { %v283_v59 = vmul.f32 7.0, %v2044_v58  ;;  %v2529_v58 = vld [vmem:[%s3241_s0 + $0xf0] sm:$0xff] }
  0xa3   :  { %vm355_vm14 = vcmp.gt.s32.totalorder %v1945_v56, 0 }
  0xa4   :  { %v356_v45 = vsel %vm355_vm14, %v1945_v56, 0  ;;  %vm931_vm14 = vcmp.eq.s32.totalorder %v2443_v16, %v578_v50  ;;  %v1948_v5 = vtrunc.f32 %v283_v59  ;;  %v516_v59 = vadd.s32 144, %v2451_v19 }
  0xa5   :  { %2016 = vset.pattern.permute.xlu1 %v2077_v60  ;;  %v2424_v39 = vpop.permute.xlu1 %635  ;;  %v2429_v26 = vpop.permute.xlu0 %632  ;;  %vm419_vm2 = vcmp.lt.s32.totalorder %v356_v45, 6 }
  0xa6   :  { %1076 = vperm.xlu1 %2016, %v2042_v31   ;;  %v420_v0 = vsel %vm419_vm2, %v356_v45, 6  ;;  %v1918_v31 = vtrunc.f32 %v76_v7 }
  0xa7   :  { %v473_v33 = vadd.s32 50, %v420_v0  ;;  %v2045_v0 = vld [vmem:[%s3241_s0 + $0x48] sm:$0xff] }
  0xa9   :  { %v2432_v61 = vpop.permute.xlu1 %641  ;;  %v2435_v8 = vpop.permute.xlu0 %638 }
  0xaa   :  { %1156 = vperm.xlu1 %2016, %v2292_v55   ;;  %v2043_v55 = vld [vmem:[%s3241_s0 + $0x58] sm:$0xff] }
  0xab   :  { %v282_v12 = vmul.f32 7.0, %v2043_v55 }
  0xad   :  { %v2437_v10 = vpop.permute.xlu1 %647  ;;  %v645_v11 = vpop.permute.xlu0 %644  ;;  %v1946_v22 = vtrunc.f32 %v282_v12  ;;  %v2079_v12 = vmov 0.0  }
  0xae   :  { %2017 = vset.pattern.permute.xlu1 %v2076_v21  ;;  %vm707_vm9 = vcmp.eq.s32.totalorder %v2443_v16, %v645_v11  ;;  %vm708_vm6 = vcmp.eq.s32.totalorder %v2443_v16, %v2437_v10 }
  0xaf   :  { %831 = vperm.xlu1 %2017, %v488_v63   ;;  %vm739_vm10 = vmor %vm3247_vm3, %vm707_vm9  ;;  %v1919_v63 = vcvt.f32.s32 %v1918_v31 }
  0xb0   :  { %vm740_vm9 = vmor %vm3247_vm3, %vm708_vm6 }
  0xb1   :  { %v2445_v1 = vpop.permute.xlu0 %653  ;;  %vm169_vm2 = vcmp.gt.s32.totalorder %v1919_v63, 0 }
  0xb3   :  { %v805_v18 = vpop.permute.xlu1 %804  ;;  %2018 = vset.pattern.permute.xlu1 %v2077_v60 }
  0xb4   :  { %1161 = vperm.xlu1 %2018, %v2223_v30   ;;  %v1947_v30 = vcvt.f32.s32 %v1946_v22  ;;  %vm867_vm11 = vcmp.eq.s32.totalorder %v2443_v16, %v805_v18  ;;  %v1949_v18 = vcvt.f32.s32 %v1948_v5  ;;  %v170_v22 = vsel %vm169_vm2, %v1919_v63, 0 }
  0xb5   :  { %v2456_v24 = vpop.permute.xlu0 %656  ;;  %vm899_vm13 = vmor %vm739_vm10, %vm867_vm11  ;;  %v77_v5 = vmul.f32 48.0, %v2529_v58 }
  0xb6   :  { %vm357_vm8 = vcmp.gt.s32.totalorder %v1947_v30, 0  ;;  %vm963_vm15 = vmor %vm899_vm13, %vm931_vm14 }
  0xb7   :  { %v760_v25 = vpop.permute.xlu1 %759  ;;  %v358_v46 = vsel %vm357_vm8, %v1947_v30, 0  ;;  %v1669_v45 = vsel %vm963_vm15, 1.0, %v2079_v12  ;;  %v300_v30 = vmul.f32 7.0, %v2470_v36 }
  0xb8   :  { %vm852_vm5 = vcmp.eq.s32.totalorder %v2443_v16, %v760_v25  ;;  %2019 = vset.pattern.permute.xlu1 %v2075_v3  ;;  %vm421_vm12 = vcmp.lt.s32.totalorder %v358_v46, 6  ;;  %v579_v25 = vadd.s32 57, %v547_v17 }
  0xb9   :  { %vm2461_vm7 = vmor %vm724_vm4, %vm852_vm5  ;;  %674 = vperm.xlu1 %2019, %v265_v23   ;;  %v2465_v32 = vpop.permute.xlu0 %665  ;;  %v422_v56 = vsel %vm421_vm12, %v358_v46, 6  ;;  %vm359_vm4 = vcmp.gt.s32.totalorder %v1949_v18, 0  ;;  %vm233_vm5 = vcmp.lt.s32.totalorder %v170_v22, 47  ;;  %v1982_v10 = vtrunc.f32 %v300_v30 }
  0xba   :  { %v474_v11 = vadd.s32 50, %v422_v56  ;;  %v360_v28 = vsel %vm359_vm4, %v1949_v18, 0  ;;  %vm932_vm8 = vcmp.eq.s32.totalorder %v2443_v16, %v579_v25  ;;  %v234_v34 = vsel %vm233_vm5, %v170_v22, 47  ;;  %v2046_v18 = vld [vmem:[%s3241_s0 + $0x70] sm:$0xff] }
  0xbb   :  { %vm423_vm12 = vcmp.lt.s32.totalorder %v360_v28, 6  ;;  %v1983_v56 = vcvt.f32.s32 %v1982_v10  ;;  %vm714_vm15 = vcmp.eq.s32.totalorder %v2443_v16, %v2465_v32  ;;  %v285_v22 = vmul.f32 7.0, %v2046_v18 }
  0xbc   :  { %v2472_v48 = vpop.permute.xlu1 %650  ;;  %v424_v31 = vsel %vm423_vm12, %v360_v28, 6  ;;  %vm2556_vm5 = vmor %vm3247_vm3, %vm714_vm15  ;;  %v3256_v10 = vmov 0  ;;  %vm710_vm15 = vcmp.eq.s32.totalorder %v2443_v16, %v2445_v1 }
  0xbd   :  { %2020 = vset.pattern.permute.xlu1 %v2076_v21  ;;  %v2476_v41 = vpop.permute.xlu0 %668  ;;  %v475_v4 = vadd.s32 50, %v424_v31  ;;  %vm393_vm14 = vcmp.gt.s32.totalorder %v1983_v56, 0  ;;  %vm709_vm2 = vcmp.eq.s32.totalorder %v2443_v16, %v2472_v48 }
  0xbe   :  { %786 = vperm.xlu1 %2020, %v473_v33   ;;  %v394_v17 = vsel %vm393_vm14, %v1983_v56, 0  ;;  %vm715_vm4 = vcmp.eq.s32.totalorder %v2443_v16, %v2476_v41  ;;  %v3258_v56 = vmov 0 }
  0xc1   :  { %v2482_v52 = vpop.permute.xlu1 %762  ;;  %v2484_v53 = vpop.permute.xlu0 %677 }
  0xc2   :  { %834 = vperm.xlu1 %2020, %v489_v20   ;;  %v268_v20 = vadd.s32 2, %v234_v34 }
  0xc5   :  { %v2490_v54 = vpop.permute.xlu1 %810  ;;  %v2493_v62 = vpop.permute.xlu0 %680 }
  0xc6   :  { %2021 = vset.pattern.permute.xlu1 %v2077_v60  ;;  %vm869_vm6 = vcmp.eq.s32.totalorder %v2443_v16, %v2490_v54  ;;  %v1952_v54 = vtrunc.f32 %v285_v22 }
  0xc7   :  { %1166 = vperm.xlu1 %2021, %v2235_v42  }
  0xc9   :  { %v2498_v55 = vpop.permute.xlu0 %689 }
  0xca   :  { %v1127_v2 = vpop.permute.xlu1 %1126 }
  0xcb   :  { %2022 = vset.pattern.permute.xlu1 %v2076_v21  ;;  %v1220_v42 = vsel %vm3246_vm0, %v1127_v2, %v1669_v45 }
  0xcc   :  { %789 = vperm.xlu1 %2022, %v474_v11   ;;  %1804 = vmatprep.mubr.msk.f32.mxu1 %vm3245_vm1, %v1220_v42  ;;  %v548_v11 = vand.u32 15, %v516_v59  ;;  %v1920_v42 = vtrunc.f32 %v77_v5  ;;  %v499_v59 = vadd.s32 8, %v2451_v19 }
  0xce   :  { %v2507_v14 = vpop.permute.xlu0 %756  ;;  %v580_v25 = vadd.s32 57, %v548_v11  ;;  %v1921_v30 = vcvt.f32.s32 %v1920_v42  ;;  %v531_v18 = vand.u32 15, %v499_v59  ;;  %v2048_v59 = vld [vmem:[%s3241_s0 + $0xd8] sm:$0xff] }
  0xcf   :  { %v2505_v23 = vpop.permute.xlu1 %765 }
  0xd0   :  { %2023 = vset.pattern.permute.xlu1 %v2077_v60  ;;  %vm933_vm12 = vcmp.eq.s32.totalorder %v2443_v16, %v580_v25  ;;  %v530_v25 = vand.u32 15, %v2451_v19 }
  0xd1   :  { %1091 = vperm.xlu1 %2023, %v2045_v0   ;;  %v517_v0 = vadd.s32 152, %v2451_v19 }
  0xd2   :  { %v808_v33 = vpop.permute.xlu0 %807 }
  0xd3   :  { %vm868_vm10 = vcmp.eq.s32.totalorder %v2443_v16, %v808_v33  ;;  %v301_v33 = vmul.f32 7.0, %v2529_v58  ;;  %v549_v34 = vand.u32 15, %v517_v0  ;;  %v2624_v0 = vld [vmem:[%s3241_s0 + $0x78] sm:$0xff] }
  0xd4   :  { %v2520_v40 = vpop.permute.xlu1 %1051  ;;  %vm900_vm11 = vmor %vm740_vm9, %vm868_vm10  ;;  %vm457_vm9 = vcmp.lt.s32.totalorder %v394_v17, 6  ;;  %v286_v32 = vmul.f32 7.0, %v2624_v0 }
  0xd5   :  { %1171 = vperm.xlu1 %2023, %v2335_v9   ;;  %vm964_vm13 = vmor %vm900_vm11, %vm932_vm8  ;;  %v1984_v31 = vtrunc.f32 %v301_v33  ;;  %v563_v33 = vadd.s32 57, %v531_v18 }
  0xd6   :  { %v1670_v7 = vsel %vm964_vm13, 1.0, %v2079_v12  ;;  %v2524_v46 = vpop.permute.xlu0 %813  ;;  %vm741_vm8 = vmor %vm3247_vm3, %vm709_vm2  ;;  %vm171_vm2 = vcmp.gt.s32.totalorder %v1921_v30, 0 }
  0xd7   :  { %vm2569_vm10 = vmor %vm3247_vm3, %vm715_vm4 }
  0xd8   :  { %v1132_v50 = vpop.permute.xlu1 %1131  ;;  %vm901_vm13 = vmor %vm741_vm8, %vm869_vm6  ;;  %vm870_vm8 = vcmp.eq.s32.totalorder %v2443_v16, %v2524_v46  ;;  %v500_v46 = vadd.s32 16, %v2451_v19 }
  0xd9   :  { %v1221_v9 = vsel %vm3246_vm0, %v1132_v50, %v1670_v7  ;;  %2024 = vset.pattern.permute.xlu1 %v2075_v3  ;;  %vm965_vm4 = vmor %vm901_vm13, %vm933_vm12  ;;  %v1953_v50 = vcvt.f32.s32 %v1952_v54  ;;  %vm3260_vm12 = vcmask 596992  }
  0xda   :  { %683 = vperm.xlu1 %2024, %v268_v20   ;;  %1805 = vmatmul.mubr.msk.f32.vlgmr.msra.gmra.mrb[0].mxu1 %vm3245_vm1, %v1221_v9  ;;  %v2536_v63 = vpop.permute.xlu0 %816  ;;  %v458_v20 = vsel %vm457_vm9, %v394_v17, 6  ;;  %v581_v9 = vadd.s32 57, %v549_v34  ;;  %vm742_vm6 = vmor %vm3247_vm3, %vm710_vm15  ;;  %vm718_vm9 = vcmp.eq.s32.totalorder %v2443_v16, %v2484_v53  ;;  %v1985_v17 = vcvt.f32.s32 %v1984_v31 }
  0xdb   :  { %v492_v1 = vadd.s32 50, %v458_v20  ;;  %vm2616_vm15 = vmor %vm3247_vm3, %vm718_vm9  ;;  %v501_v34 = vadd.s32 24, %v2451_v19  ;;  %v3265_v20 = vmov 0  ;;  %v562_v31 = vadd.s32 57, %v530_v25 }
  0xdc   :  { %vm395_vm9 = vcmp.gt.s32.totalorder %v1985_v17, 0  ;;  %v502_v25 = vadd.s32 32, %v2451_v19 }
  0xdd   :  { %v2539_v2 = vpop.permute.xlu1 %659 }
  0xde   :  { %2025 = vset.pattern.permute.xlu1 %v2076_v21  ;;  %v2544_v45 = vpop.permute.xlu0 %771 }
  0xdf   :  { %792 = vperm.xlu1 %2025, %v475_v4   ;;  %v172_v4 = vsel %vm171_vm2, %v1921_v30, 0  ;;  %vm719_vm2 = vcmp.eq.s32.totalorder %v2443_v16, %v2493_v62  ;;  %v503_v62 = vadd.s32 40, %v2451_v19 }
  0xe0   :  { %vm235_vm13 = vcmp.lt.s32.totalorder %v172_v4, 47 }
  0xe1   :  { %v236_v54 = vsel %vm235_vm13, %v172_v4, 47 }
  0xe2   :  { %v2562_v48 = vpop.permute.xlu1 %768  ;;  %v826_v41 = vpop.permute.xlu0 %825 }
  0xe3   :  { %2026 = vset.pattern.permute.xlu1 %v2077_v60  ;;  %vm874_vm11 = vcmp.eq.s32.totalorder %v2443_v16, %v826_v41 }
  0xe4   :  { %1096 = vperm.xlu1 %2026, %v2420_v15   ;;  %vm2579_vm14 = vmor %vm2556_vm5, %vm874_vm11 }
  0xe5   :  { %v3257_v10 = vsel %vm2579_vm14, 4294967295, %v3256_v10  ;;  %vm902_vm11 = vmor %vm742_vm6, %vm870_vm8 }
  0xe6   :  { %v829_v15 = vpop.permute.xlu0 %828 }
  0xe7   :  { %v2585_v7 = vpop.permute.xlu1 %1056  ;;  %vm875_vm1 = vcmp.eq.s32.totalorder %v2443_v16, %v829_v15  ;;  %v532_v15 = vand.u32 15, %v500_v46 }
  0xe8   :  { %1176 = vperm.xlu1 %2026, %v2402_v51   ;;  %vm2592_vm5 = vmor %vm2569_vm10, %vm875_vm1  ;;  %v1671_v51 = vsel %vm965_vm4, 1.0, %v2079_v12  ;;  %vm363_vm1 = vcmp.gt.s32.totalorder %v1953_v50, 0  ;;  %vm934_vm10 = vcmp.eq.s32.totalorder %v2443_v16, %v581_v9  ;;  %vm691_vm4 = vcmp.eq.s32.totalorder %v2443_v16, %v2376_v43 }
  0xe9   :  { %v3259_v56 = vsel %vm2592_vm5, 4294967295, %v3258_v56  ;;  %v364_v53 = vsel %vm363_vm1, %v1953_v50, 0  ;;  %vm2631_vm6 = vmor %vm902_vm11, %vm934_vm10  ;;  %v1954_v9 = vtrunc.f32 %v286_v32  ;;  %vm3288_vm5 = vcmp.eq.s32.totalorder %v2443_v16, 1 }
  0xea   :  { %v2603_v11 = vpop.permute.xlu0 %783  ;;  %vm2653_vm10 = vmor %vm3247_vm3, %vm719_vm2  ;;  %vm427_vm11 = vcmp.lt.s32.totalorder %v364_v53, 6  ;;  %vm3283_vm2 = vcmask 596992  }
  0xeb   :  { %v1137_v5 = vpop.permute.xlu1 %1136  ;;  %vm2665_vm13 = vmor %vm3247_vm3, %vm691_vm4  ;;  %v428_v46 = vsel %vm427_vm11, %v364_v53, 6  ;;  %vm3277_vm11 = vcmp.eq.s32.totalorder %v2443_v16, %v2391_v35  ;;  %v564_v35 = vadd.s32 57, %v532_v15  ;;  %v534_v15 = vand.u32 15, %v502_v25 }
  0xec   :  { %v1222_v42 = vsel %vm3246_vm0, %v1137_v5, %v1671_v51  ;;  %2027 = vset.pattern.permute.xlu1 %v2076_v21  ;;  %v269_v51 = vadd.s32 2, %v236_v54  ;;  %v396_v5 = vsel %vm395_vm9, %v1985_v17, 0  ;;  %v533_v17 = vand.u32 15, %v501_v34 }
  0xed   :  { %843 = vperm.xlu1 %2027, %v492_v1   ;;  %1807 = vmatprep.mubr.msk.f32.mxu1 %vm3260_vm12, %v1222_v42  ;;  %vm693_vm12 = vcmp.eq.s32.totalorder %v2443_v16, %v2374_v6  ;;  %v1672_v1 = vsel %vm2631_vm6, 1.0, %v2079_v12  ;;  %v518_v42 = vadd.s32 160, %v2451_v19  ;;  %v3273_v6 = vmov 0 }
  0xee   :  { %v838_v41 = vpop.permute.xlu0 %837  ;;  %v477_v30 = vadd.s32 50, %v428_v46  ;;  %v565_v34 = vadd.s32 57, %v533_v17  ;;  %v519_v46 = vadd.s32 168, %v2451_v19 }
  0xef   :  { %vm878_vm8 = vcmp.eq.s32.totalorder %v2443_v16, %v838_v41  ;;  %v1955_v41 = vcvt.f32.s32 %v1954_v9 }
  0xf0   :  { %v2636_v28 = vpop.permute.xlu1 %819  ;;  %vm2643_vm1 = vmor %vm2616_vm15, %vm878_vm8  ;;  %vm694_vm15 = vcmp.eq.s32.totalorder %v2443_v16, %v2379_v27  ;;  %v3278_v27 = vmov 0 }
  0xf1   :  { %v3266_v20 = vsel %vm2643_vm1, 4294967295, %v3265_v20  ;;  %2028 = vset.pattern.permute.xlu1 %v2077_v60  ;;  %vm2684_vm8 = vmor %vm3247_vm3, %vm693_vm12 }
  0xf2   :  { %1181 = vperm.xlu1 %2028, %v2048_v59   ;;  %v841_v4 = vpop.permute.xlu0 %840  ;;  %vm2705_vm12 = vmor %vm3247_vm3, %vm694_vm15  ;;  %vm3280_vm15 = vcmp.eq.s32.totalorder %v2443_v16, %v2456_v24  ;;  %v550_v24 = vand.u32 15, %v518_v42  ;;  %v566_v59 = vadd.s32 57, %v534_v15 }
  0xf3   :  { %vm879_vm6 = vcmp.eq.s32.totalorder %v2443_v16, %v841_v4  ;;  %vm2727_vm9 = vmor %vm3247_vm3, %vm3280_vm15 }
  0xf4   :  { %vm2695_vm4 = vmor %vm2653_vm10, %vm879_vm6  ;;  %vm459_vm10 = vcmp.lt.s32.totalorder %v396_v5, 6 }
  0xf5   :  { %v3274_v6 = vsel %vm2695_vm4, 4294967295, %v3273_v6  ;;  %v1142_v18 = vpop.permute.xlu1 %1141  ;;  %vm2718_vm6 = vmor %vm3247_vm3, %vm3277_vm11  ;;  %vm915_vm11 = vcmp.eq.s32.totalorder %v2443_v16, %v562_v31  ;;  %vm3284_vm4 = vcmp.eq.s32.totalorder %v2443_v16, %v2507_v14  ;;  %vm3285_vm3 = vcmp.eq.s32.totalorder %v2443_v16, %v563_v33 }
  0xf6   :  { %v1223_v32 = vsel %vm3246_vm0, %v1142_v18, %v1672_v1  ;;  %2029 = vset.pattern.permute.xlu1 %v2075_v3  ;;  %v3279_v27 = vsel %vm2718_vm6, 4294967295, %v3278_v27  ;;  %vm722_vm0 = vcmp.eq.s32.totalorder %v2443_v16, %v2498_v55  ;;  %v2734_v3 = vpop.permute.xlu0 %795  ;;  %vm883_vm15 = vmor %vm2665_vm13, %vm3284_vm4  ;;  %v460_v54 = vsel %vm459_vm10, %v396_v5, 6 }
  0xf7   :  { %686 = vperm.xlu1 %2029, %v269_v51   ;;  %1808 = vmatmul.mubr.msk.f32.gmra.mrb[2].mxu1 %vm3283_vm2, %v1223_v32  ;;  %vm2746_vm1 = vmor %vm2461_vm7, %vm3285_vm3  ;;  %vm853_vm2 = vcmp.eq.s32.totalorder %v2443_v16, %v2482_v52  ;;  %vm365_vm13 = vcmp.gt.s32.totalorder %v1955_v41, 0  ;;  %vm854_vm3 = vcmp.eq.s32.totalorder %v2443_v16, %v2505_v23  ;;  %vm917_vm4 = vcmp.eq.s32.totalorder %v2443_v16, %v564_v35 }
  0xf8   :  { %vm2754_vm14 = vmor %vm3288_vm5, %vm722_vm0  ;;  %v582_v52 = vadd.s32 57, %v550_v24  ;;  %v493_v33 = vadd.s32 50, %v460_v54  ;;  %vm871_vm10 = vcmp.eq.s32.totalorder %v2443_v16, %v2536_v63  ;;  %v3291_v23 = vmov 0 }
  0xf9   :  { %vm947_vm7 = vmor %vm883_vm15, %vm915_vm11  ;;  %v366_v31 = vsel %vm365_vm13, %v1955_v41, 0  ;;  %vm918_vm11 = vcmp.eq.s32.totalorder %v2443_v16, %v565_v34  ;;  %v1654_v4 = vsel %vm2746_vm1, 1.0, %v2079_v12  ;;  %v551_v35 = vand.u32 15, %v519_v46 }
  0xfa   :  { %v2758_v50 = vpop.permute.xlu1 %662  ;;  %v850_v29 = vpop.permute.xlu0 %849  ;;  %vm885_vm0 = vmor %vm2684_vm8, %vm853_vm2  ;;  %v1653_v9 = vsel %vm947_vm7, 1.0, %v2079_v12  ;;  %vm855_vm2 = vcmp.eq.s32.totalorder %v2443_v16, %v2562_v48  ;;  %vm429_vm13 = vcmp.lt.s32.totalorder %v366_v31, 6 }
  0xfb   :  { %2031 = vset.pattern.permute.xlu1 %v2076_v21  ;;  %vm882_vm5 = vcmp.eq.s32.totalorder %v2443_v16, %v850_v29  ;;  %vm886_vm8 = vmor %vm2705_vm12, %vm854_vm3  ;;  %vm3293_vm3 = vcmp.eq.s32.totalorder %v2443_v16, 0  ;;  %v430_v17 = vsel %vm429_vm13, %v366_v31, 6  ;;  %vm856_vm13 = vcmp.eq.s32.totalorder %v2443_v16, %v2544_v45 }
  0xfc   :  { %798 = vperm.xlu1 %2031, %v477_v30   ;;  %vm2771_vm6 = vmor %vm2754_vm14, %vm882_vm5  ;;  %vm935_vm14 = vcmp.eq.s32.totalorder %v2443_v16, %v582_v52  ;;  %v478_v41 = vadd.s32 50, %v430_v17  ;;  %v506_v29 = vadd.s32 64, %v2451_v19 }
  0xfd   :  { %v3292_v23 = vsel %vm2771_vm6, 4294967295, %v3291_v23  ;;  %vm949_vm15 = vmor %vm885_vm0, %vm917_vm4  ;;  %vm3295_vm4 = vnez %v3279_v27 }
  0xfe   :  { %vm903_vm5 = vmor %vm2727_vm9, %vm871_vm10  ;;  %v1655_v51 = vsel %vm949_vm15, 1.0, %v2079_v12  ;;  %vm919_vm9 = vcmp.eq.s32.totalorder %v2443_v16, %v566_v59  ;;  %vm3296_vm10 = vcmask 596992   ;;  %v520_v59 = vadd.s32 176, %v2451_v19 }
  0xff   :  { %v2781_v63 = vpop.permute.xlu1 %774  ;;  %v1047_v1 = vpop.permute.xlu0 %1046  ;;  %vm950_vm12 = vmor %vm886_vm8, %vm918_vm11 }
 0x100   :  { %846 = vperm.xlu1 %2031, %v493_v33   ;;  %v1204_v48 = vsel %vm3293_vm3, %v1047_v1, %v1653_v9  ;;  %vm3294_vm7 = vmmov %vm3293_vm3  ;;  %v1656_v18 = vsel %vm950_vm12, 1.0, %v2079_v12 }
 0x101   :  { %v1205_v5 = vsel %vm3294_vm7, %v2520_v40, %v1654_v4  ;;  %vm887_vm0 = vmor %vm3295_vm4, %vm855_vm2  ;;  %1780 = vmatprep.mubr.msk.f32.mxu0 %vm3296_vm10, %v1204_v48  ;;  %v535_v40 = vand.u32 15, %v503_v62  ;;  %vm712_vm7 = vcmp.eq.s32.totalorder %v2443_v16, %v2539_v2  ;;  %v504_v2 = vadd.s32 48, %v2451_v19 }
 0x102   :  { %vm967_vm6 = vmor %vm903_vm5, %vm935_vm14  ;;  %vm696_vm5 = vcmp.eq.s32.totalorder %v2443_v16, %v2389_v49  ;;  %v583_v49 = vadd.s32 57, %v551_v35  ;;  %v521_v4 = vadd.s32 184, %v2451_v19 }
 0x103   :  { %vm3297_vm1 = vmmov %vm3293_vm3  ;;  %v2803_v42 = vpop.permute.xlu1 %822  ;;  %v1062_v22 = vpop.permute.xlu0 %1061  ;;  %v1673_v32 = vsel %vm967_vm6, 1.0, %v2079_v12  ;;  %v567_v27 = vadd.s32 57, %v535_v40  ;;  %v536_v15 = vand.u32 15, %v504_v2 }
 0x104   :  { %v1206_v43 = vsel %vm3297_vm1, %v2585_v7, %v1655_v51  ;;  %vm3298_vm11 = vmmov %vm3296_vm10  ;;  %2032 = vset.pattern.permute.xlu1 %v2077_v60  ;;  %v2049_v7 = vld [vmem:[%s3241_s0 + $0xe0] sm:$0xff] }
 0x105   :  { %1781 = vmatmul.mubr.msk.f32.vlgmr.msra.gmra.mrb[0].mxu0 %vm3298_vm11, %v1205_v5  ;;  %vm3299_vm8 = vmmov %vm3296_vm10  ;;  %1186 = vperm.xlu1 %2032, %v2049_v7   ;;  %vm920_vm10 = vcmp.eq.s32.totalorder %v2443_v16, %v567_v27  ;;  %vm872_vm11 = vcmp.eq.s32.totalorder %v2443_v16, %v2636_v28  ;;  %v505_v28 = vadd.s32 56, %v2451_v19  ;;  %v568_v9 = vadd.s32 57, %v536_v15 }
 0x106   :  { %1783 = vmatprep.mubr.msk.f32.mxu0 %vm3299_vm8, %v1206_v43  ;;  %vm951_vm15 = vmor %vm887_vm0, %vm919_vm9  ;;  %vm3305_vm9 = vcmp.eq.s32.totalorder %v2443_v16, 1  ;;  %v553_v5 = vand.u32 15, %v521_v4 }
 0x107   :  { %vm3300_vm2 = vmmov %vm3297_vm1  ;;  %v1657_v53 = vsel %vm951_vm15, 1.0, %v2079_v12  ;;  %v1067_v30 = vpop.permute.xlu0 %1066  ;;  %v537_v33 = vand.u32 15, %v505_v28 }
 0x108   :  { %v1207_v25 = vsel %vm3300_vm2, %v1062_v22, %v1656_v18  ;;  %vm3301_vm14 = vmmov %vm3299_vm8  ;;  %v1147_v24 = vpop.permute.xlu1 %1146 }
 0x109   :  { %1784 = vmatmul.mubr.msk.f32.gmra.mrb[2].mxu0 %vm3301_vm14, %v1207_v25  ;;  %vm3302_vm12 = vmmov %vm3297_vm1  ;;  %2033 = vset.pattern.permute.xlu1 %v2076_v21  ;;  %v2050_v21 = vld [vmem:[%s3241_s0 + $0x68] sm:$0xff]  ;;  %vm936_vm14 = vcmp.eq.s32.totalorder %v2443_v16, %v583_v49  ;;  %v585_v25 = vadd.s32 57, %v553_v5  ;;  %v525_v5 = vadd.s32 216, %v2451_v19 }
 0x10a   :  { %v1224_v55 = vsel %vm3302_vm12, %v1147_v24, %v1673_v32  ;;  %vm3303_vm6 = vmmov %vm3297_vm1  ;;  %801 = vperm.xlu1 %2033, %v478_v41   ;;  %v522_v24 = vadd.s32 192, %v2451_v19 }
 0x10b   :  { %v1208_v54 = vsel %vm3303_vm6, %v1067_v30, %v1657_v53  ;;  %vm3304_vm3 = vmmov %vm3299_vm8  ;;  %v1082_v48 = vpop.permute.xlu0 %1081 }
 0x10c   :  { %1786 = vmatprep.mubr.msk.f32.mxu0 %vm3304_vm3, %v1208_v54  ;;  %vm728_vm4 = vmor %vm3305_vm9, %vm696_vm5 }
 0x10d   :  { %vm3306_vm0 = vmmov %vm3304_vm3  ;;  %v778_v45 = vpop.permute.xlu1 %777  ;;  %vm697_vm3 = vcmp.eq.s32.totalorder %v2443_v16, %v2397_v38  ;;  %v538_v38 = vand.u32 15, %v506_v29 }
 0x10e   :  { %1810 = vmatprep.mubr.msk.f32.mxu1 %vm3306_vm0, %v1224_v55  ;;  %vm888_vm1 = vmor %vm728_vm4, %vm856_vm13  ;;  %2035 = vset.pattern.permute.xlu1 %v2077_v60  ;;  %vm699_vm4 = vcmp.eq.s32.totalorder %v2443_v16, %v2409_v44  ;;  %v554_v55 = vand.u32 15, %v522_v24 }
 0x10f   :  { %vm3307_vm8 = vmmov %vm3305_vm9  ;;  %1111 = vperm.xlu1 %2035, %v2050_v21   ;;  %v1087_v40 = vpop.permute.xlu0 %1086 }
 0x110   :  { %vm744_vm15 = vmor %vm3307_vm8, %vm712_vm7  ;;  %vm698_vm7 = vcmp.eq.s32.totalorder %v2443_v16, %v2395_v37  ;;  %v569_v37 = vadd.s32 57, %v537_v33  ;;  %v586_v49 = vadd.s32 57, %v554_v55  ;;  %v509_v33 = vadd.s32 88, %v2451_v19 }
 0x111   :  { %vm952_vm2 = vmor %vm888_vm1, %vm920_vm10 }
 0x112   :  { %vm904_vm5 = vmor %vm744_vm15, %vm872_vm11  ;;  %v1658_v14 = vsel %vm952_vm2, 1.0, %v2079_v12  ;;  %v1072_v34 = vpop.permute.xlu1 %1071  ;;  %vm857_vm11 = vcmp.eq.s32.totalorder %v2443_v16, %v2781_v63 }
 0x113   :  { %vm968_vm13 = vmor %vm904_vm5, %vm936_vm14  ;;  %1191 = vperm.xlu1 %2035, %v2470_v36  }
 0x114   :  { %vm3308_vm12 = vmmov %vm3303_vm6  ;;  %v1674_v52 = vsel %vm968_vm13, 1.0, %v2079_v12  ;;  %vm858_vm13 = vcmp.eq.s32.totalorder %v2443_v16, %v778_v45  ;;  %v507_v45 = vadd.s32 72, %v2451_v19 }
 0x115   :  { %v1209_v60 = vsel %vm3308_vm12, %v1072_v34, %v1658_v14  ;;  %vm3309_vm6 = vmmov %vm3306_vm0  ;;  %v523_v14 = vadd.s32 200, %v2451_v19 }
 0x116   :  { %1787 = vmatmul.mubr.msk.f32.gmra.mrb[4].mxu0 %vm3309_vm6, %v1209_v60  ;;  %v1152_v31 = vpop.permute.xlu1 %1151  ;;  %vm3310_vm9 = vmmov %vm3308_vm12  ;;  %vm921_vm12 = vcmp.eq.s32.totalorder %v2443_v16, %v568_v9  ;;  %v510_v9 = vadd.s32 96, %v2451_v19 }
 0x117   :  { %v1225_v36 = vsel %vm3310_vm9, %v1152_v31, %v1674_v52  ;;  %1196 = vperm.xlu1 %2035, %v2529_v58   ;;  %vm3311_vm10 = vmmov %vm3307_vm8  ;;  %vm713_vm8 = vcmp.eq.s32.totalorder %v2443_v16, %v2758_v50  ;;  %v552_v58 = vand.u32 15, %v520_v59  ;;  %v570_v50 = vadd.s32 57, %v538_v38 }
 0x118   :  { %1811 = vmatmul.mubr.msk.f32.gmra.mrb[4].mxu1 %vm3306_vm0, %v1225_v36  ;;  %vm729_vm1 = vmor %vm3311_vm10, %vm697_vm3  ;;  %vm873_vm9 = vcmp.eq.s32.totalorder %v2443_v16, %v2803_v42  ;;  %v555_v60 = vand.u32 15, %v523_v14  ;;  %v512_v14 = vadd.s32 112, %v2451_v19 }
 0x119   :  { %vm3312_vm15 = vmmov %vm3311_vm10  ;;  %v584_v63 = vadd.s32 57, %v552_v58  ;;  %v524_v58 = vadd.s32 208, %v2451_v19 }
 0x11a   :  { %vm730_vm2 = vmor %vm3312_vm15, %vm698_vm7 }
 0x11b   :  { %vm3313_vm14 = vmmov %vm3311_vm10  ;;  %1121 = vperm.xlu1 %2035, %v2624_v0   ;;  %v2879_v62 = vpop.permute.xlu1 %671 }
 0x11c   :  { %vm2873_vm5 = vmor %vm3313_vm14, %vm699_vm4  ;;  %vm922_vm4 = vcmp.eq.s32.totalorder %v2443_v16, %v569_v37  ;;  %vm923_vm14 = vcmp.eq.s32.totalorder %v2443_v16, %v570_v50  ;;  %v541_v37 = vand.u32 15, %v509_v33 }
 0x11d   :  { %vm889_vm6 = vmor %vm729_vm1, %vm857_vm11 }
 0x11e   :  { %vm3316_vm3 = vmmov %vm3311_vm10 }
 0x11f   :  { %vm745_vm7 = vmor %vm3316_vm3, %vm713_vm8  ;;  %vm3320_vm3 = vcmask 596992  }
 0x120   :  { %vm890_vm0 = vmor %vm730_vm2, %vm858_vm13  ;;  %v781_v0 = vpop.permute.xlu1 %780  ;;  %vm937_vm2 = vcmp.eq.s32.totalorder %v2443_v16, %v584_v63  ;;  %v542_v63 = vand.u32 15, %v510_v9 }
 0x121   :  { %vm953_vm10 = vmor %vm889_vm6, %vm921_vm12  ;;  %vm859_vm11 = vcmp.eq.s32.totalorder %v2443_v16, %v781_v0  ;;  %vm3319_vm6 = vcmp.eq.s32.totalorder %v2443_v16, 0 }
 0x122   :  { %vm2887_vm15 = vmor %vm745_vm7, %vm873_vm9  ;;  %v1659_v43 = vsel %vm953_vm10, 1.0, %v2079_v12  ;;  %v574_v0 = vadd.s32 57, %v542_v63 }
 0x123   :  { %vm954_vm1 = vmor %vm890_vm0, %vm922_vm4 }
 0x124   :  { %vm891_vm8 = vmor %vm2873_vm5, %vm859_vm11  ;;  %v1660_v51 = vsel %vm954_vm1, 1.0, %v2079_v12 }
 0x125   :  { %vm955_vm13 = vmor %vm891_vm8, %vm923_vm14  ;;  %v1077_v17 = vpop.permute.xlu1 %1076  ;;  %vm3327_vm14 = vnez %v3257_v10  ;;  %v539_v10 = vand.u32 15, %v507_v45 }
 0x126   :  { %v1661_v42 = vsel %vm955_vm13, 1.0, %v2079_v12  ;;  %vm969_vm12 = vmor %vm2887_vm15, %vm937_vm2  ;;  %v1210_v18 = vsel %vm3319_vm6, %v1077_v17, %v1659_v43  ;;  %vm938_vm15 = vcmp.eq.s32.totalorder %v2443_v16, %v585_v25  ;;  %vm939_vm2 = vcmp.eq.s32.totalorder %v2443_v16, %v586_v49  ;;  %v1102_v43 = vpop.permute.xlu0 %1101 }
 0x127   :  { %1789 = vmatprep.mubr.msk.f32.mxu0 %vm3320_vm3, %v1210_v18  ;;  %vm3321_vm5 = vmmov %vm3319_vm6  ;;  %v1675_v7 = vsel %vm969_vm12, 1.0, %v2079_v12  ;;  %vm3330_vm13 = vnez %v3259_v56  ;;  %vm700_vm6 = vcmp.eq.s32.totalorder %v2443_v16, %v2407_v57  ;;  %v571_v28 = vadd.s32 57, %v539_v10 }
 0x128   :  { %v1211_v46 = vsel %vm3321_vm5, %v1082_v48, %v1660_v51  ;;  %vm3322_vm7 = vmmov %vm3320_vm3  ;;  %v587_v57 = vadd.s32 57, %v555_v60  ;;  %v557_v17 = vand.u32 15, %v525_v5  ;;  %v511_v10 = vadd.s32 104, %v2451_v19 }
 0x129   :  { %1790 = vmatmul.mubr.msk.f32.gmra.mrb[6].mxu0 %vm3322_vm7, %v1211_v46  ;;  %vm3323_vm9 = vmmov %vm3321_vm5  ;;  %v1157_v32 = vpop.permute.xlu1 %1156  ;;  %vm3332_vm7 = vcmp.eq.s32.totalorder %v2443_v16, 1  ;;  %v544_v60 = vand.u32 15, %v512_v14 }
 0x12a   :  { %v1212_v22 = vsel %vm3323_vm9, %v1087_v40, %v1661_v42  ;;  %vm3324_vm4 = vmmov %vm3320_vm3  ;;  %v1107_v25 = vpop.permute.xlu0 %1106 }
 0x12b   :  { %1792 = vmatprep.mubr.msk.f32.mxu0 %vm3324_vm4, %v1212_v22  ;;  %vm3325_vm0 = vmmov %vm3321_vm5 }
 0x12c   :  { %v1226_v41 = vsel %vm3325_vm0, %v1157_v32, %v1675_v7  ;;  %vm3326_vm10 = vmmov %vm3320_vm3 }
 0x12d   :  { %1813 = vmatprep.mubr.msk.f32.mxu1 %vm3326_vm10, %v1226_v41  ;;  %vm970_vm1 = vmor %vm3327_vm14, %vm938_vm15  ;;  %vm716_vm15 = vcmp.eq.s32.totalorder %v2443_v16, %v2879_v62  ;;  %v589_v41 = vadd.s32 57, %v557_v17 }
 0x12e   :  { %v832_v27 = vpop.permute.xlu1 %831  ;;  %v1676_v53 = vsel %vm970_vm1, 1.0, %v2079_v12  ;;  %vm3328_vm11 = vmmov %vm3325_vm0  ;;  %v1117_v63 = vpop.permute.xlu0 %1116 }
 0x12f   :  { %vm3329_vm8 = vmmov %vm3320_vm3  ;;  %vm860_vm3 = vcmp.eq.s32.totalorder %v2443_v16, %v2603_v11  ;;  %vm876_vm14 = vcmp.eq.s32.totalorder %v2443_v16, %v832_v27  ;;  %v508_v11 = vadd.s32 80, %v2451_v19 }
 0x130   :  { %vm971_vm12 = vmor %vm3330_vm13, %vm939_vm2  ;;  %vm940_vm2 = vcmp.eq.s32.totalorder %v2443_v16, %v587_v57  ;;  %v529_v57 = vadd.s32 248, %v2451_v19 }
 0x131   :  { %v1677_v34 = vsel %vm971_vm12, 1.0, %v2079_v12  ;;  %vm3331_vm5 = vmmov %vm3325_vm0  ;;  %vm924_vm0 = vcmp.eq.s32.totalorder %v2443_v16, %v571_v28  ;;  %v540_v36 = vand.u32 15, %v508_v11  ;;  %v576_v11 = vadd.s32 57, %v544_v60  ;;  %v1250_v60 = vld [vmem:[%s3243_s2 + $0x20] sm:$0xff] }
 0x132   :  { %vm732_vm9 = vmor %vm3332_vm7, %vm700_vm6 }
 0x133   :  { %v1162_v35 = vpop.permute.xlu1 %1161  ;;  %vm892_vm10 = vmor %vm732_vm9, %vm860_vm3  ;;  %v572_v50 = vadd.s32 57, %v540_v36  ;;  %v513_v36 = vadd.s32 120, %v2451_v19 }
 0x134   :  { %v1227_v30 = vsel %vm3328_vm11, %v1162_v35, %v1676_v53  ;;  %vm956_vm1 = vmor %vm892_vm10, %vm924_vm0 }
 0x135   :  { %1814 = vmatmul.mubr.msk.f32.gmra.mrb[6].mxu1 %vm3329_vm8, %v1227_v30  ;;  %vm3333_vm11 = vmmov %vm3332_vm7  ;;  %v1662_v52 = vsel %vm956_vm1, 1.0, %v2079_v12  ;;  %vm702_vm7 = vcmp.eq.s32.totalorder %v2443_v16, %v2413_v13  ;;  %v573_v13 = vadd.s32 57, %v541_v37 }
 0x136   :  { %vm748_vm8 = vmor %vm3333_vm11, %vm716_vm15 }
 0x137   :  { %vm908_vm13 = vmor %vm748_vm8, %vm876_vm14 }
 0x138   :  { %v675_v54 = vpop.permute.xlu1 %674  ;;  %vm972_vm12 = vmor %vm908_vm13, %vm940_vm2 }
 0x139   :  { %vm3334_vm6 = vmmov %vm3331_vm5  ;;  %v1678_v38 = vsel %vm972_vm12, 1.0, %v2079_v12  ;;  %vm717_vm1 = vcmp.eq.s32.totalorder %v2443_v16, %v675_v54  ;;  %v526_v54 = vadd.s32 224, %v2451_v19 }
 0x13a   :  { %vm3335_vm3 = vmmov %vm3324_vm4 }
 0x13b   :  { %vm3336_vm9 = vmmov %vm3334_vm6  ;;  %v558_v45 = vand.u32 15, %v526_v54 }
 0x13c   :  { %vm3337_vm0 = vmmov %vm3335_vm3 }
 0x13d   :  { %v787_v21 = vpop.permute.xlu1 %786  ;;  %vm3338_vm10 = vmmov %vm3333_vm11 }
 0x13e   :  { %vm861_vm14 = vcmp.eq.s32.totalorder %v2443_v16, %v787_v21  ;;  %vm3339_vm11 = vmmov %vm3338_vm10 }
 0x13f   :  { %vm734_vm8 = vmor %vm3339_vm11, %vm702_vm7 }
 0x140   :  { %vm3340_vm2 = vmmov %vm3338_vm10 }
 0x141   :  { %v835_v2 = vpop.permute.xlu1 %834 }
 0x142   :  { %vm877_vm7 = vcmp.eq.s32.totalorder %v2443_v16, %v835_v2  ;;  %v590_v2 = vadd.s32 57, %v558_v45 }
 0x146   :  { %v1167_v15 = vpop.permute.xlu1 %1166 }
 0x147   :  { %v1228_v29 = vsel %vm3331_vm5, %v1167_v15, %v1677_v34  ;;  %vm701_vm5 = vcmp.eq.s32.totalorder %v2443_v16, %v2415_v47  ;;  %v527_v34 = vadd.s32 232, %v2451_v19 }
 0x148   :  { %1816 = vmatprep.mubr.msk.f32.mxu1 %vm3324_vm4, %v1228_v29  ;;  %vm703_vm4 = vcmp.eq.s32.totalorder %v2443_v16, %v2429_v26  ;;  %vm733_vm15 = vmor %vm3338_vm10, %vm701_vm5  ;;  %v556_v26 = vand.u32 15, %v524_v58 }
 0x149   :  { %vm2971_vm13 = vmor %vm3340_vm2, %vm703_vm4 }
 0x14a   :  { %vm3343_vm5 = vmmov %vm3340_vm2  ;;  %v588_v4 = vadd.s32 57, %v556_v26  ;;  %vm927_vm2 = vcmp.eq.s32.totalorder %v2443_v16, %v574_v0 }
 0x14b   :  { %v790_v56 = vpop.permute.xlu1 %789 }
 0x14c   :  { %vm862_vm12 = vcmp.eq.s32.totalorder %v2443_v16, %v790_v56  ;;  %v559_v56 = vand.u32 15, %v527_v34  ;;  %v1251_v34 = vld [vmem:[%s3243_s2 + $0x28] sm:$0xff] }
 0x14d   :  { %vm894_vm4 = vmor %vm734_vm8, %vm862_vm12  ;;  %vm941_vm8 = vcmp.eq.s32.totalorder %v2443_v16, %v588_v4  ;;  %v1202_v4 = vpop.permute.xlu0 %1201 }
 0x14e   :  { %v591_v33 = vadd.s32 57, %v559_v56 }
 0x150   :  { %v1092_v31 = vpop.permute.xlu1 %1091 }
 0x151   :  { %v1213_v59 = vsel %vm3334_vm6, %v1092_v31, %v1662_v52  ;;  %vm925_vm6 = vcmp.eq.s32.totalorder %v2443_v16, %v572_v50  ;;  %v1252_v31 = vld [vmem:[%s3243_s2 + $0x30] sm:$0xff] }
 0x152   :  { %1793 = vmatmul.mubr.msk.f32.gmra.mrb[8].mxu0 %vm3335_vm3, %v1213_v59  ;;  %vm893_vm3 = vmor %vm733_vm15, %vm861_vm14 }
 0x153   :  { %vm957_vm10 = vmor %vm893_vm3, %vm925_vm6  ;;  %vm3346_vm3 = vcmp.eq.s32.totalorder %v2443_v16, 0 }
 0x154   :  { %v1172_v44 = vpop.permute.xlu1 %1171  ;;  %v1663_v18 = vsel %vm957_vm10, 1.0, %v2079_v12 }
 0x155   :  { %v1229_v62 = vsel %vm3336_vm9, %v1172_v44, %v1678_v38  ;;  %vm749_vm9 = vmor %vm3343_vm5, %vm717_vm1  ;;  %vm3347_vm5 = vcmask 596992   ;;  %v545_v44 = vand.u32 15, %v513_v36 }
 0x156   :  { %1817 = vmatmul.mubr.msk.f32.gmra.mrb[8].mxu1 %vm3337_vm0, %v1229_v62  ;;  %vm926_vm0 = vcmp.eq.s32.totalorder %v2443_v16, %v573_v13  ;;  %vm2983_vm11 = vmor %vm749_vm9, %vm877_vm7 }
 0x157   :  { %vm958_vm15 = vmor %vm894_vm4, %vm926_vm0 }
 0x158   :  { %v1664_v42 = vsel %vm958_vm15, 1.0, %v2079_v12  ;;  %vm973_vm6 = vmor %vm2983_vm11, %vm941_vm8  ;;  %vm942_vm11 = vcmp.eq.s32.totalorder %v2443_v16, %v589_v41  ;;  %vm943_vm8 = vcmp.eq.s32.totalorder %v2443_v16, %v590_v2 }
 0x159   :  { %v2976_v1 = vpop.permute.xlu1 %683  ;;  %vm3349_vm9 = vmmov %vm3347_vm5  ;;  %v1679_v27 = vsel %vm973_vm6, 1.0, %v2079_v12  ;;  %vm3357_vm6 = vnez %v3274_v6 }
 0x15a   :  { %vm3350_vm7 = vmmov %vm3346_vm3 }
 0x15b   :  { %vm3351_vm0 = vmmov %vm3347_vm5 }
 0x15c   :  { %vm3352_vm4 = vmmov %vm3346_vm3 }
 0x15d   :  { %vm3353_vm10 = vmmov %vm3351_vm0 }
 0x15e   :  { %v793_v51 = vpop.permute.xlu1 %792 }
 0x15f   :  { %vm863_vm14 = vcmp.eq.s32.totalorder %v2443_v16, %v793_v51 }
 0x160   :  { %vm895_vm1 = vmor %vm2971_vm13, %vm863_vm14 }
 0x161   :  { %vm959_vm12 = vmor %vm895_vm1, %vm927_vm2  ;;  %vm3354_vm2 = vnez %v3266_v20  ;;  %v543_v20 = vand.u32 15, %v511_v10  ;;  %v1248_v10 = vld [vmem:[%s3243_s2 + $0x10] sm:$0xff] }
 0x162   :  { %v1665_v40 = vsel %vm959_vm12, 1.0, %v2079_v12  ;;  %vm3348_vm13 = vmmov %vm3346_vm3  ;;  %vm704_vm12 = vcmp.eq.s32.totalorder %v2443_v16, %v2424_v39  ;;  %v528_v39 = vadd.s32 240, %v2451_v19 }
 0x163   :  { %v1097_v46 = vpop.permute.xlu1 %1096  ;;  %v1215_v7 = vsel %vm3348_vm13, %v1102_v43, %v1664_v42  ;;  %v1216_v32 = vsel %vm3350_vm7, %v1107_v25, %v1665_v40  ;;  %vm974_vm15 = vmor %vm3354_vm2, %vm942_vm11  ;;  %v575_v29 = vadd.s32 57, %v543_v20  ;;  %vm705_vm13 = vcmp.eq.s32.totalorder %v2443_v16, %v2435_v8  ;;  %v1263_v40 = vld [vmem:[%s3243_s2 + $0x88] sm:$0xff] }
 0x164   :  { %v1214_v22 = vsel %vm3346_vm3, %v1097_v46, %v1663_v18  ;;  %v1680_v30 = vsel %vm974_vm15, 1.0, %v2079_v12  ;;  %vm3355_vm14 = vmmov %vm3346_vm3  ;;  %v560_v59 = vand.u32 15, %v528_v39  ;;  %v1262_v46 = vld [vmem:[%s3243_s2 + $0x80] sm:$0xff] }
 0x165   :  { %1795 = vmatprep.mubr.msk.f32.mxu0 %vm3347_vm5, %v1214_v22  ;;  %vm3356_vm1 = vmmov %vm3351_vm0  ;;  %vm864_vm5 = vcmp.eq.s32.totalorder %v2443_v16, %v2734_v3  ;;  %v561_v3 = vand.u32 15, %v529_v57 }
 0x166   :  { %1796 = vmatmul.mubr.msk.f32.gmra.mrb[10].mxu0 %vm3349_vm9, %v1215_v7  ;;  %vm975_vm3 = vmor %vm3357_vm6, %vm943_vm8  ;;  %vm3358_vm9 = vcmp.eq.s32.totalorder %v2443_v16, 1  ;;  %vm929_vm8 = vcmp.eq.s32.totalorder %v2443_v16, %v576_v11  ;;  %v592_v37 = vadd.s32 57, %v560_v59  ;;  %v1267_v11 = vld [vmem:[%s3243_s2 + $0xa8] sm:$0xff] }
 0x167   :  { %v1177_v53 = vpop.permute.xlu1 %1176  ;;  %1798 = vmatprep.mubr.msk.f32.mxu0 %vm3351_vm0, %v1216_v32  ;;  %v1681_v52 = vsel %vm975_vm3, 1.0, %v2079_v12  ;;  %vm736_vm7 = vmor %vm3358_vm9, %vm704_vm12  ;;  %v593_v38 = vadd.s32 57, %v561_v3 }
 0x168   :  { %v1230_v35 = vsel %vm3352_vm4, %v1177_v53, %v1679_v27  ;;  %vm928_vm4 = vcmp.eq.s32.totalorder %v2443_v16, %v575_v29  ;;  %vm3359_vm11 = vmmov %vm3355_vm14 }
 0x169   :  { %1819 = vmatprep.mubr.msk.f32.mxu1 %vm3353_vm10, %v1230_v35  ;;  %vm896_vm10 = vmor %vm736_vm7, %vm864_vm5  ;;  %vm944_vm7 = vcmp.eq.s32.totalorder %v2443_v16, %v591_v33  ;;  %v1253_v33 = vld [vmem:[%s3243_s2 + $0x38] sm:$0xff] }
 0x16a   :  { %vm3360_vm2 = vmmov %vm3358_vm9 }
 0x16b   :  { %vm737_vm15 = vmor %vm3360_vm2, %vm705_vm13 }
 0x16c   :  { %v844_v24 = vpop.permute.xlu1 %843  ;;  %vm3046_vm6 = vmor %vm896_vm10, %vm928_vm4  ;;  %vm706_vm10 = vcmp.eq.s32.totalorder %v2443_v16, %v2432_v61  ;;  %v577_v61 = vadd.s32 57, %v545_v44  ;;  %v1268_v44 = vld [vmem:[%s3243_s2 + $0xb0] sm:$0xff] }
 0x16d   :  { %vm880_vm3 = vcmp.eq.s32.totalorder %v2443_v16, %v844_v24  ;;  %vm3363_vm5 = vmmov %vm3360_vm2  ;;  %v1666_v19 = vsel %vm3046_vm6, 1.0, %v2079_v12  ;;  %v1247_v24 = vld [vmem:[%s3243_s2 + $0x8] sm:$0xff] }
 0x171   :  { %v1182_v55 = vpop.permute.xlu1 %1181 }
 0x172   :  { %v1231_v49 = vsel %vm3355_vm14, %v1182_v55, %v1680_v30  ;;  %vm720_vm14 = vcmp.eq.s32.totalorder %v2443_v16, %v2976_v1  ;;  %v1246_v30 = vld [vmem:[%s3243_s2] sm:$0xff] }
 0x173   :  { %1820 = vmatmul.mubr.msk.f32.gmra.mrb[10].mxu1 %vm3356_vm1, %v1231_v49  ;;  %vm752_vm13 = vmor %vm3363_vm5, %vm720_vm14 }
 0x174   :  { %vm3366_vm14 = vmmov %vm3363_vm5  ;;  %vm3368_vm5 = vcmask 596992  }
 0x176   :  { %v687_v21 = vpop.permute.xlu1 %686 }
 0x17b   :  { %v799_v28 = vpop.permute.xlu1 %798 }
 0x17c   :  { %vm865_vm0 = vcmp.eq.s32.totalorder %v2443_v16, %v799_v28 }
 0x17d   :  { %vm897_vm12 = vmor %vm737_vm15, %vm865_vm0  ;;  %vm721_vm0 = vcmp.eq.s32.totalorder %v2443_v16, %v687_v21  ;;  %vm946_vm15 = vcmp.eq.s32.totalorder %v2443_v16, %v593_v38  ;;  %v1249_v21 = vld [vmem:[%s3243_s2 + $0x18] sm:$0xff] }
 0x17e   :  { %vm961_vm9 = vmor %vm897_vm12, %vm929_vm8  ;;  %vm3367_vm8 = vcmp.eq.s32.totalorder %v2443_v16, 0  ;;  %vm945_vm12 = vcmp.eq.s32.totalorder %v2443_v16, %v592_v37  ;;  %v1269_v37 = vld [vmem:[%s3243_s2 + $0xb8] sm:$0xff] }
 0x17f   :  { %v847_v15 = vpop.permute.xlu1 %846  ;;  %v1667_v58 = vsel %vm961_vm9, 1.0, %v2079_v12  ;;  %vm3369_vm6 = vmmov %vm3367_vm8 }
 0x180   :  { %vm881_vm4 = vcmp.eq.s32.totalorder %v2443_v16, %v847_v15  ;;  %v1218_v47 = vsel %vm3369_vm6, %v1117_v63, %v1667_v58  ;;  %v1255_v63 = vld [vmem:[%s3243_s2 + $0x48] sm:$0xff] }
 0x184   :  { %v1187_v6 = vpop.permute.xlu1 %1186 }
 0x185   :  { %v1232_v8 = vsel %vm3359_vm11, %v1187_v6, %v1681_v52  ;;  %vm912_vm11 = vmor %vm752_vm13, %vm880_vm3  ;;  %v1266_v52 = vld [vmem:[%s3243_s2 + $0xa0] sm:$0xff] }
 0x186   :  { %1822 = vmatprep.mubr.msk.f32.mxu1 %vm3356_vm1, %v1232_v8  ;;  %vm3063_vm2 = vmor %vm912_vm11, %vm944_vm7 }
 0x187   :  { %vm753_vm1 = vmor %vm3366_vm14, %vm721_vm0  ;;  %vm3372_vm0 = vnez %v3292_v23  ;;  %v1682_v26 = vsel %vm3063_vm2, 1.0, %v2079_v12 }
 0x188   :  { %vm913_vm3 = vmor %vm753_vm1, %vm881_vm4 }
 0x189   :  { %v802_v9 = vpop.permute.xlu1 %801  ;;  %vm3370_vm13 = vmmov %vm3366_vm14 }
 0x18a   :  { %vm738_vm9 = vmor %vm3370_vm13, %vm706_vm10  ;;  %vm866_vm7 = vcmp.eq.s32.totalorder %v2443_v16, %v802_v9 }
 0x18b   :  { %vm3371_vm11 = vmmov %vm3368_vm5 }
 0x18c   :  { %vm978_vm14 = vmor %vm3372_vm0, %vm946_vm15 }
 0x18d   :  { %vm977_vm4 = vmor %vm913_vm3, %vm945_vm12  ;;  %v1684_v23 = vsel %vm978_vm14, 1.0, %v2079_v12 }
 0x18e   :  { %v1112_v50 = vpop.permute.xlu1 %1111  ;;  %vm3373_vm1 = vmmov %vm3369_vm6  ;;  %v1683_v48 = vsel %vm977_vm4, 1.0, %v2079_v12 }
 0x18f   :  { %v1217_v13 = vsel %vm3367_vm8, %v1112_v50, %v1666_v19  ;;  %vm930_vm8 = vcmp.eq.s32.totalorder %v2443_v16, %v577_v61  ;;  %vm3374_vm10 = vmmov %vm3371_vm11  ;;  %v1265_v16 = vld [vmem:[%s3243_s2 + $0x98] sm:$0xff] }
 0x190   :  { %1799 = vmatmul.mubr.msk.f32.gmra.mrb[12].mxu0 %vm3368_vm5, %v1217_v13  ;;  %vm898_vm5 = vmor %vm738_vm9, %vm866_vm7  ;;  %vm1604_vm7 = vcmask 654336   ;;  %v1254_v13 = vld [vmem:[%s3243_s2 + $0x40] sm:$0xff] }
 0x191   :  { %1801 = vmatprep.mubr.msk.f32.mxu0 %vm3371_vm11, %v1218_v47  ;;  %vm962_vm15 = vmor %vm898_vm5, %vm930_vm8 }
 0x192   :  { %v1192_v1 = vpop.permute.xlu1 %1191  ;;  %vm3375_vm6 = vmmov %vm3373_vm1  ;;  %v1668_v42 = vsel %vm962_vm15, 1.0, %v2079_v12  ;;  %v1264_v12 = vld [vmem:[%s3243_s2 + $0x90] sm:$0xff] }
 0x193   :  { %v1233_v0 = vsel %vm3373_vm1, %v1192_v1, %v1682_v26  ;;  %vm3376_vm2 = vmmov %vm3373_vm1 }
 0x194   :  { %1823 = vmatmul.mubr.msk.f32.gmra.mrb[12].mxu1 %vm3374_vm10, %v1233_v0  ;;  %v1235_v43 = vsel %vm3376_vm2, %v1202_v4, %v1684_v23  ;;  %vm3377_vm12 = vmmov %vm3374_vm10  ;;  %v1271_v0 = vld [vmem:[%s3243_s2 + $0xc8] sm:$0xff]  ;;  %v1270_v4 = vld [vmem:[%s3243_s2 + $0xc0] sm:$0xff] }
 0x195   :  { %vm3378_vm3 = vmmov %vm3374_vm10 }
 0x196   :  { %v1197_v51 = vpop.permute.xlu1 %1196  ;;  %vm3379_vm13 = vmmov %vm3373_vm1 }
 0x197   :  { %v1234_v5 = vsel %vm3375_vm6, %v1197_v51, %v1683_v48  ;;  %vm3380_vm9 = vmmov %vm3378_vm3 }
 0x198   :  { %1825 = vmatprep.mubr.msk.f32.mxu1 %vm3377_vm12, %v1234_v5 }
 0x199   :  { %1826 = vmatmul.mubr.msk.f32.gmra.mrb[14].mxu1 %vm3378_vm3, %v1235_v43  ;;  %v1257_v43 = vld [vmem:[%s3243_s2 + $0x58] sm:$0xff] }
 0x19a   :  { %v1122_v17 = vpop.permute.xlu1 %1121 }
 0x19b   :  { %v1219_v18 = vsel %vm3379_vm13, %v1122_v17, %v1668_v42  ;;  %v1256_v42 = vld [vmem:[%s3243_s2 + $0x50] sm:$0xff] }
 0x19c   :  { %1802 = vmatmul.mubr.msk.f32.gmra.mrb[14].mxu0 %vm3380_vm9, %v1219_v18 }
 0x1ad   :  { %v1806_v22 = vpop.f32.mrb[0].mxu1 }
 0x1ae   :  { %v1531_v25 = vadd.f32 %v1806_v22, %v1263_v40  ;;  %v1525_v7 = vpop.f32.mrb[1].mxu1  ;;  %v1273_v22 = vld [vmem:[%s3243_s2 + $0xd8] sm:$0xff] }
 0x1af   :  { %v1526_v32 = vadd.f32 %v1525_v7, %v1262_v46 }
 0x1b0   :  { %1622 = vst.msk [vmem:[#allocation2 + $0x88] sm:$0xff] %vm1604_vm7, %v1531_v25  ;;  %v1272_v25 = vld [vmem:[%s3243_s2 + $0xd0] sm:$0xff] }
 0x1b1   :  { %1621 = vst.msk [vmem:[#allocation2 + $0x80] sm:$0xff] %vm1604_vm7, %v1526_v32 }
 0x1ca   :  { %v1809_v41 = vpop.f32.mrb[2].mxu1 }
 0x1cb   :  { %v1541_v27 = vadd.f32 %v1809_v41, %v1265_v16  ;;  %v1535_v53 = vpop.f32.mrb[3].mxu1  ;;  %v1259_v41 = vld [vmem:[%s3243_s2 + $0x68] sm:$0xff] }
 0x1cc   :  { %v1536_v35 = vadd.f32 %v1535_v53, %v1264_v12 }
 0x1cd   :  { %1624 = vst.msk [vmem:[#allocation2 + $0x98] sm:$0xff] %vm1604_vm7, %v1541_v27  ;;  %v1258_v27 = vld [vmem:[%s3243_s2 + $0x60] sm:$0xff] }
 0x1ce   :  { %1623 = vst.msk [vmem:[#allocation2 + $0x90] sm:$0xff] %vm1604_vm7, %v1536_v35 }
 0x1d8   :  { %v1782_v55 = vpop.f32.mrb[0].mxu0 }
 0x1d9   :  { %v1451_v54 = vadd.f32 %v1782_v55, %v1247_v24  ;;  %v1445_v49 = vpop.f32.mrb[1].mxu0  ;;  %v1275_v55 = vld [vmem:[%s3243_s2 + $0xe8] sm:$0xff] }
 0x1da   :  { %v1446_v45 = vadd.f32 %v1445_v49, %v1246_v30 }
 0x1db   :  { %1606 = vst.msk [vmem:[#allocation2 + $0x8] sm:$0xff] %vm1604_vm7, %v1451_v54  ;;  %v1274_v54 = vld [vmem:[%s3243_s2 + $0xe0] sm:$0xff] }
 0x1dc   :  { %1605 = vst.msk [vmem:[#allocation2] sm:$0xff] %vm1604_vm7, %v1446_v45  ;;  %v1785_v2 = vpop.f32.mrb[2].mxu0 }
 0x1dd   :  { %v1461_v14 = vadd.f32 %v1785_v2, %v1249_v21  ;;  %v1455_v28 = vpop.f32.mrb[3].mxu0  ;;  %v1277_v2 = vld [vmem:[%s3243_s2 + $0xf8] sm:$0xff] }
 0x1de   :  { %v1456_v20 = vadd.f32 %v1455_v28, %v1248_v10 }
 0x1df   :  { %1608 = vst.msk [vmem:[#allocation2 + $0x18] sm:$0xff] %vm1604_vm7, %v1461_v14  ;;  %v1276_v14 = vld [vmem:[%s3243_s2 + $0xf0] sm:$0xff] }
 0x1e0   :  { %1607 = vst.msk [vmem:[#allocation2 + $0x10] sm:$0xff] %vm1604_vm7, %v1456_v20 }
 0x1e9   :  { %v1788_v15 = vpop.f32.mrb[4].mxu0 }
 0x1ea   :  { %v1471_v29 = vadd.f32 %v1788_v15, %v1251_v34  ;;  %v1465_v57 = vpop.f32.mrb[5].mxu0 }
 0x1eb   :  { %v1466_v56 = vadd.f32 %v1465_v57, %v1250_v60  ;;  %v1812_v39 = vpop.f32.mrb[4].mxu1  ;;  %v1261_v60 = vld [vmem:[%s3243_s2 + $0x78] sm:$0xff] }
 0x1ec   :  { %1610 = vst.msk [vmem:[#allocation2 + $0x28] sm:$0xff] %vm1604_vm7, %v1471_v29  ;;  %v1551_v6 = vadd.f32 %v1812_v39, %v1267_v11  ;;  %v1545_v8 = vpop.f32.mrb[5].mxu1  ;;  %v1260_v29 = vld [vmem:[%s3243_s2 + $0x70] sm:$0xff] }
 0x1ed   :  { %1609 = vst.msk [vmem:[#allocation2 + $0x20] sm:$0xff] %vm1604_vm7, %v1466_v56  ;;  %v1546_v3 = vadd.f32 %v1545_v8, %v1266_v52 }
 0x1ee   :  { %1626 = vst.msk [vmem:[#allocation2 + $0xa8] sm:$0xff] %vm1604_vm7, %v1551_v6 }
 0x1ef   :  { %1625 = vst.msk [vmem:[#allocation2 + $0xa0] sm:$0xff] %vm1604_vm7, %v1546_v3 }
 0x1fc   :  { %v1791_v59 = vpop.f32.mrb[6].mxu0 }
 0x1fd   :  { %v1481_v36 = vadd.f32 %v1791_v59, %v1253_v33  ;;  %v1475_v9 = vpop.f32.mrb[7].mxu0 }
 0x1fe   :  { %v1476_v38 = vadd.f32 %v1475_v9, %v1252_v31 }
 0x1ff   :  { %1612 = vst.msk [vmem:[#allocation2 + $0x38] sm:$0xff] %vm1604_vm7, %v1481_v36 }
 0x200   :  { %1611 = vst.msk [vmem:[#allocation2 + $0x30] sm:$0xff] %vm1604_vm7, %v1476_v38 }
 0x208   :  { %v1815_v58 = vpop.f32.mrb[6].mxu1 }
 0x209   :  { %v1561_v19 = vadd.f32 %v1815_v58, %v1269_v37  ;;  %v1555_v62 = vpop.f32.mrb[7].mxu1 }
 0x20a   :  { %v1556_v50 = vadd.f32 %v1555_v62, %v1268_v44 }
 0x20b   :  { %1628 = vst.msk [vmem:[#allocation2 + $0xb8] sm:$0xff] %vm1604_vm7, %v1561_v19 }
 0x20c   :  { %1627 = vst.msk [vmem:[#allocation2 + $0xb0] sm:$0xff] %vm1604_vm7, %v1556_v50 }
 0x225   :  { %v1794_v61 = vpop.f32.mrb[8].mxu0 }
 0x226   :  { %v1491_v47 = vadd.f32 %v1794_v61, %v1255_v63  ;;  %v1485_v26 = vpop.f32.mrb[9].mxu0 }
 0x227   :  { %v1486_v1 = vadd.f32 %v1485_v26, %v1254_v13 }
 0x228   :  { %1614 = vst.msk [vmem:[#allocation2 + $0x48] sm:$0xff] %vm1604_vm7, %v1491_v47 }
 0x229   :  { %1613 = vst.msk [vmem:[#allocation2 + $0x40] sm:$0xff] %vm1604_vm7, %v1486_v1  ;;  %v1818_v48 = vpop.f32.mrb[8].mxu1 }
 0x22a   :  { %v1571_v51 = vadd.f32 %v1818_v48, %v1271_v0  ;;  %v1565_v23 = vpop.f32.mrb[9].mxu1 }
 0x22b   :  { %v1566_v5 = vadd.f32 %v1565_v23, %v1270_v4 }
 0x22c   :  { %1630 = vst.msk [vmem:[#allocation2 + $0xc8] sm:$0xff] %vm1604_vm7, %v1571_v51 }
 0x22d   :  { %1629 = vst.msk [vmem:[#allocation2 + $0xc0] sm:$0xff] %vm1604_vm7, %v1566_v5 }
 0x239   :  { %v1797_v17 = vpop.f32.mrb[10].mxu0 }
 0x23a   :  { %v1501_v18 = vadd.f32 %v1797_v17, %v1257_v43  ;;  %v1495_v40 = vpop.f32.mrb[11].mxu0 }
 0x23b   :  { %v1496_v46 = vadd.f32 %v1495_v40, %v1256_v42 }
 0x23c   :  { %1616 = vst.msk [vmem:[#allocation2 + $0x58] sm:$0xff] %vm1604_vm7, %v1501_v18 }
 0x23d   :  { %1615 = vst.msk [vmem:[#allocation2 + $0x50] sm:$0xff] %vm1604_vm7, %v1496_v46 }
 0x246   :  { %v1821_v7 = vpop.f32.mrb[10].mxu1 }
 0x247   :  { %v1581_v32 = vadd.f32 %v1821_v7, %v1273_v22  ;;  %v1575_v16 = vpop.f32.mrb[11].mxu1 }
 0x248   :  { %v1576_v12 = vadd.f32 %v1575_v16, %v1272_v25 }
 0x249   :  { %1632 = vst.msk [vmem:[#allocation2 + $0xd8] sm:$0xff] %vm1604_vm7, %v1581_v32 }
 0x24a   :  { %1631 = vst.msk [vmem:[#allocation2 + $0xd0] sm:$0xff] %vm1604_vm7, %v1576_v12 }
 0x263   :  { %v1800_v53 = vpop.f32.mrb[12].mxu0 }
 0x264   :  { %v1511_v35 = vadd.f32 %v1800_v53, %v1259_v41  ;;  %v1505_v24 = vpop.f32.mrb[13].mxu0 }
 0x265   :  { %v1506_v30 = vadd.f32 %v1505_v24, %v1258_v27 }
 0x266   :  { %1618 = vst.msk [vmem:[#allocation2 + $0x68] sm:$0xff] %vm1604_vm7, %v1511_v35 }
 0x267   :  { %1617 = vst.msk [vmem:[#allocation2 + $0x60] sm:$0xff] %vm1604_vm7, %v1506_v30  ;;  %v1824_v49 = vpop.f32.mrb[12].mxu1 }
 0x268   :  { %v1591_v45 = vadd.f32 %v1824_v49, %v1275_v55  ;;  %v1585_v21 = vpop.f32.mrb[13].mxu1 }
 0x269   :  { %v1586_v10 = vadd.f32 %v1585_v21, %v1274_v54 }
 0x26a   :  { %1634 = vst.msk [vmem:[#allocation2 + $0xe8] sm:$0xff] %vm1604_vm7, %v1591_v45 }
 0x26b   :  { %1633 = vst.msk [vmem:[#allocation2 + $0xe0] sm:$0xff] %vm1604_vm7, %v1586_v10 }
 0x26c   :  { %v1827_v28 = vpop.f32.mrb[14].mxu1 }
 0x26d   :  { %v1601_v20 = vadd.f32 %v1827_v28, %v1277_v2  ;;  %v1595_v34 = vpop.f32.mrb[15].mxu1 }
 0x26e   :  { %v1596_v15 = vadd.f32 %v1595_v34, %v1276_v14 }
 0x26f   :  { %1636 = vst.msk [vmem:[#allocation2 + $0xf8] sm:$0xff] %vm1604_vm7, %v1601_v20  ;;  %v1803_v57 = vpop.f32.mrb[14].mxu0 }
 0x270   :  { %1635 = vst.msk [vmem:[#allocation2 + $0xf0] sm:$0xff] %vm1604_vm7, %v1596_v15  ;;  %v1521_v56 = vadd.f32 %v1803_v57, %v1261_v60  ;;  %v1515_v11 = vpop.f32.mrb[15].mxu0 }
 0x271   :  { %v1516_v52 = vadd.f32 %v1515_v11, %v1260_v29 }
 0x272   :  { %1620 = vst.msk [vmem:[#allocation2 + $0x78] sm:$0xff] %vm1604_vm7, %v1521_v56 }
 0x273   :  { %1619 = vst.msk [vmem:[#allocation2 + $0x70] sm:$0xff] %vm1604_vm7, %v1516_v52 }
 0x274   :  { %2062 = shalt.err (!%p2059_p4)
}
 0x275   :  { %s2063_s25 = scalar_lea.hbm %s3244_s3, 4096 }
 0x276   :  { %p2064_p5 = scmp.ne.s32.totalorder %s3244_s3, %s2063_s25  ;;  %p2067_p6 = scmp.lt.u32.totalorder %s2063_s25, %s3244_s3 }
 0x278   :  { %p2069_p7 = pnand %p2067_p6, %p2064_p5 }
 0x27a   :  { %2072 = shalt.err (!%p2069_p7)
}
 0x27b   :  { %s2081_s30 = smov 128   ;;  %s2082_s4 = smov 8  }
 0x27c   :  { %1648 = dma.vmem_to_hbm [thread:$0]  %s1643_s22, 4096, %s3244_s3, [#allocation3], %s2081_s30, %s2081_s30, %s2082_s4  }
 0x27d   :  { %2073 = dma.done.wait [#allocation3], 4096  }
 0x27e   :  { %2074 = vsyncadd [#allocation3], 4294963200 }
 0x27f   :  { %1652 = vsyncpa [#allocation3], 1 }

</bundles_post_ra>
